<compile_context>
chip_gen: v6e
topology: v6e:2x2x1
jax: 0.10.0
libtpu: 0.0.40
codegen_flags: <defaults>
</compile_context>

<pallas_src>
import functools
import math

import jax
import jax.numpy as jnp
import numpy as np
from jax.experimental import pallas as pl
from jax.experimental.pallas import tpu as pltpu


# -----------------------------------------------------------------------------
# Generation-dependent knobs
# -----------------------------------------------------------------------------
@functools.lru_cache(maxsize=None)
def _vmem_budget_bytes():
    """Scoped-VMEM budget ~= 3/4 of physical VMEM (96 MiB on v5e/v6e, 48 on v7x)."""
    try:
        cap = int(pltpu.get_tpu_info().vmem_capacity_bytes)
    except Exception:  # unknown chip / interpret mode -> conservative v7x value
        cap = 64 * 1024 * 1024
    return int(cap * 3 // 4)


def _ffn_row_tile(m, max_tile):
    """Biggest multiple-of-8 divisor of m that is <= max_tile; if none exists,
    return max_tile itself and let the cdiv grid pad the final block (safe
    because the FFN/LayerNorm are purely row-wise)."""
    if m <= max_tile:
        return m
    best = max_tile - (max_tile % 8)
    for t in range(best, 7, -8):
        if m % t == 0:
            return t
    return best


# -----------------------------------------------------------------------------
# Kernel 1: fused QKV proj + per-head attention + out_proj + residual + norm1.
# One grid step per batch element; q/k/v/scores never leave VMEM.
# -----------------------------------------------------------------------------
def _attn_kernel(x_ref, pos_ref, wqk_ref, bqk_ref, wv_ref, bv_ref,
                 wo_ref, bo_ref, g_ref, beta_ref, o_ref,
                 q_hm, k_hm, v_hm, o_hm,
                 *, num_heads, eps, mxu_dtype):
    H = num_heads
    L, E = x_ref.shape[-2], x_ref.shape[-1]
    Dh = E // H

    x = x_ref[...].reshape(L, E).astype(jnp.float32)
    qk_in = x + pos_ref[...].reshape(L, E).astype(jnp.float32)

    # Fused q|k projection (softmax scale pre-folded into Wq) and v projection:
    # two wide full-MXU matmuls, low-precision operands, fp32 accumulation.
    qk = jnp.dot(qk_in.astype(mxu_dtype), wqk_ref[...],
                 preferred_element_type=jnp.float32) + bqk_ref[...]      # (L, 2E)
    v = jnp.dot(x.astype(mxu_dtype), wv_ref[...],
                preferred_element_type=jnp.float32) + bv_ref[...]        # (L, E)

    # One-time scatter into head-major scratch so the head loop only does
    # full-tile leading-dim indexing (no masked 32-lane slices, no dynamic
    # lane offsets).  These copies touch q/k/v exactly once.
    qk_c = qk.astype(mxu_dtype)
    v_c = v.astype(mxu_dtype)
    for h in range(H):                       # static loop: tiny (L, Dh) copies only
        q_hm[h] = qk_c[:, h * Dh:(h + 1) * Dh]
        k_hm[h] = qk_c[:, E + h * Dh:E + (h + 1) * Dh]
        v_hm[h] = v_c[:, h * Dh:(h + 1) * Dh]

    # Per-head attention with lax.fori_loop: bounds the (L, L) fp32 score/exp
    # temporaries to a single head (VMEM-safe on v7x's 64 MiB).
    approx = mxu_dtype != jnp.float32

    def head_body(h, carry):
        qh = q_hm[h]                                           # (L, Dh)
        kh = k_hm[h]
        vh = v_hm[h]
        s = jax.lax.dot_general(qh, kh, (((1,), (1,)), ((), ())),
                                preferred_element_type=jnp.float32)      # (L, L)
        m = jnp.max(s, axis=-1, keepdims=True)
        p = jnp.exp(s - m)                   # fp32 exp (keeps v5e happy; accuracy)
        denom = jnp.sum(p, axis=-1, keepdims=True)
        oh = jnp.dot(p.astype(mxu_dtype), vh, preferred_element_type=jnp.float32)
        oh = oh * pl.reciprocal(denom, approx=approx)
        o_hm[h] = oh.astype(o_hm.dtype)
        return carry

    jax.lax.fori_loop(0, H, head_body, 0)
    # TODO(synk): flash-style key-chunk tiling (online softmax) so the per-head
    #             temporary is (L, Tk) instead of (L, L) for very long L.
    # TODO(synk): key_padding_mask support (forward is exercised with mask=None).

    # Re-assemble heads (static lane concat) + out_proj + residual + LayerNorm1.
    attn = jnp.concatenate([o_hm[h] for h in range(H)], axis=-1)         # (L, E)
    proj = (jnp.dot(attn, wo_ref[...], preferred_element_type=jnp.float32)
            + bo_ref[...])
    y = x + proj
    mean = jnp.mean(y, axis=-1, keepdims=True)
    yc = y - mean
    var = jnp.mean(yc * yc, axis=-1, keepdims=True)
    out = yc * jax.lax.rsqrt(var + eps) * g_ref[...] + beta_ref[...]
    o_ref[...] = out.reshape(o_ref.shape).astype(o_ref.dtype)


def attention_block(x, pos, wqk, bqk, wv, bv, wo, bo, gamma, beta,
                    *, num_heads, L, E, eps, mxu_dtype):
    if x.ndim == 2:
        # Primary lane-blocked path: x is (L, N*E); the BlockSpec delivers the
        # per-batch (L, E) slab directly from the sequence-major data.
        N = x.shape[1] // E
        data_spec = pl.BlockSpec((L, E), lambda n: (0, n))
        out_shape = jax.ShapeDtypeStruct((L, N * E), x.dtype)
    else:
        # Fallback path: x is batch-major (N, L, E) (pre-transposed by caller).
        N = x.shape[0]
        data_spec = pl.BlockSpec((1, L, E), lambda n: (n, 0, 0))
        out_shape = jax.ShapeDtypeStruct((N, L, E), x.dtype)

    H = num_heads
    Dh = E // H

    def const(arr):
        # Resident operand: constant index map -> single initial DMA, stays in
        # VMEM across grid steps.
        # TODO(synk): pipeline_mode=pl.Buffered(1) to drop the redundant second
        #             buffer of these resident operands (small VMEM saving).
        return pl.BlockSpec(arr.shape, lambda n: (0, 0))

    wbytes = int((wqk.size + wv.size + wo.size) * wqk.dtype.itemsize)
    cost = pl.CostEstimate(
        flops=int(N * (2 * L * E * 3 * E      # q|k and v projections
                       + 4 * L * L * E        # scores + weighted sum (all heads)
                       + 2 * L * E * E)),     # out_proj
        transcendentals=int(N * H * L * L),
        bytes_accessed=int(3 * L * N * E * 4 + wbytes + 10 * E * 4),
    )

    return pl.pallas_call(
        functools.partial(_attn_kernel, num_heads=H, eps=eps, mxu_dtype=mxu_dtype),
        grid=(N,),
        in_specs=[data_spec, data_spec,
                  const(wqk), const(bqk), const(wv), const(bv),
                  const(wo), const(bo), const(gamma), const(beta)],
        out_specs=data_spec,
        out_shape=out_shape,
        scratch_shapes=[pltpu.VMEM((H, L, Dh), mxu_dtype) for _ in range(4)],
        compiler_params=pltpu.CompilerParams(
            dimension_semantics=("parallel",),
            vmem_limit_bytes=_vmem_budget_bytes()),
        cost_estimate=cost,
    )(x, pos, wqk, bqk, wv, bv, wo, bo, gamma, beta)


# -----------------------------------------------------------------------------
# Kernel 2: fused FFN (linear1 + ReLU + linear2) + residual + norm2, row-tiled.
# -----------------------------------------------------------------------------
def _ffn_kernel(h_ref, w1_ref, b1_ref, w2_ref, b2_ref, g_ref, beta_ref,
                o_ref, *, eps, mxu_dtype):
    h = h_ref[...].astype(jnp.float32)                                   # (TM, E)
    ff = jnp.dot(h.astype(mxu_dtype), w1_ref[...],
                 preferred_element_type=jnp.float32) + b1_ref[...]       # (TM, F)
    ff = jnp.maximum(ff, 0.0)                 # ReLU activation never leaves VMEM
    y = jnp.dot(ff.astype(mxu_dtype), w2_ref[...],
                preferred_element_type=jnp.float32) + b2_ref[...]        # (TM, E)
    y = y + h
    mean = jnp.mean(y, axis=-1, keepdims=True)
    yc = y - mean
    var = jnp.mean(yc * yc, axis=-1, keepdims=True)
    o_ref[...] = (yc * jax.lax.rsqrt(var + eps) * g_ref[...]
                  + beta_ref[...]).astype(o_ref.dtype)


def ffn_block(h, w1, b1, w2, b2, gamma, beta, *, eps, mxu_dtype):
    M, E = h.shape
    F = w1.shape[1]
    budget = _vmem_budget_bytes()
    max_tile = 1024 if budget >= 80 * 1024 * 1024 else 512   # v5e/v6e vs v7x
    TM = _ffn_row_tile(M, max_tile)

    row = pl.BlockSpec((TM, E), lambda i: (i, 0))

    def const(arr):
        return pl.BlockSpec(arr.shape, lambda i: (0, 0))

    wbytes = int((w1.size + w2.size) * w1.dtype.itemsize)
    cost = pl.CostEstimate(
        flops=int(4 * M * E * F),
        transcendentals=0,
        bytes_accessed=int(2 * M * E * 4 + wbytes + (2 * F + 4 * E) * 4),
    )

    return pl.pallas_call(
        functools.partial(_ffn_kernel, eps=eps, mxu_dtype=mxu_dtype),
        grid=(pl.cdiv(M, TM),),
        in_specs=[row, const(w1), const(b1), const(w2), const(b2),
                  const(gamma), const(beta)],
        out_specs=row,
        out_shape=jax.ShapeDtypeStruct((M, E), h.dtype),
        compiler_params=pltpu.CompilerParams(
            dimension_semantics=("parallel",),
            vmem_limit_bytes=budget),
        cost_estimate=cost,
    )(h, w1, b1, w2, b2, gamma, beta)


# -----------------------------------------------------------------------------
# Full layer forward
# -----------------------------------------------------------------------------
def transformer_encoder_layer(src, pos, params, *, mxu_dtype=jnp.bfloat16,
                              eps=1e-5):
    """DETR TransformerEncoderLayer.forward (eval mode: dropouts are identity).

    src, pos: (L, N, E) sequence-major, like the PyTorch module.
    mxu_dtype: matmul-operand dtype; bf16 (default) for speed with fp32
               accumulation, jnp.float32 for exact fp32 parity.
    """
    L, N, E = src.shape
    H = params["num_heads"]
    Dh = E // H
    scale = 1.0 / math.sqrt(Dh)

    # Fold the 1/sqrt(Dh) softmax scale into Wq/bq, concatenate Wq|Wk so the
    # kernel issues one wide MXU matmul, and cast weights to the MXU dtype once.
    wqk = jnp.concatenate([params["wq"] * scale, params["wk"]], axis=1).astype(mxu_dtype)
    bqk = jnp.concatenate([params["bq"] * scale, params["bk"]], axis=1)
    wv = params["wv"].astype(mxu_dtype)
    wo = params["wo"].astype(mxu_dtype)
    w1 = params["w1"].astype(mxu_dtype)
    w2 = params["w2"].astype(mxu_dtype)

    # Primary path: keep native sequence-major layout; per-batch (L, E) slabs
    # come straight out of the (L, N*E) lane view -> zero XLA transposes.
    lane_path = (E % 128 == 0) or (N == 1)
    if lane_path:
        x_in = src.reshape(L, N * E)
        p_in = pos.reshape(L, N * E)
    else:
        x_in = jnp.transpose(src, (1, 0, 2))      # fallback: batch-major
        p_in = jnp.transpose(pos, (1, 0, 2))

    h = attention_block(x_in, p_in, wqk, bqk, wv, params["bv"], wo, params["bo"],
                        params["g1"], params["beta1"],
                        num_heads=H, L=L, E=E, eps=eps, mxu_dtype=mxu_dtype)

    rows = h.reshape(L * N, E)   # free reshape in both layouts (FFN/LN row-wise)
    out = ffn_block(rows, w1, params["bf1"], w2, params["bf2"],
                    params["g2"], params["beta2"], eps=eps, mxu_dtype=mxu_dtype)

    if lane_path:
        return out.reshape(L, N, E)
    return jnp.transpose(out.reshape(N, L, E), (1, 0, 2))


# -----------------------------------------------------------------------------
# Pure-JAX fp32 reference (mirrors PyTorch eval-mode semantics) for validation
# -----------------------------------------------------------------------------
def reference_forward(src, pos, p):
    L, N, E = src.shape
    H = p["num_heads"]
    Dh = E // H
    scale = 1.0 / math.sqrt(Dh)

    qk_in = src + pos
    q = qk_in @ p["wq"] + p["bq"][0]
    k = qk_in @ p["wk"] + p["bk"][0]
    v = src @ p["wv"] + p["bv"][0]

    def sh(x):
        return x.reshape(L, N, H, Dh).transpose(1, 2, 0, 3)   # (N, H, L, Dh)

    qh, kh, vh = sh(q), sh(k), sh(v)
    s = jnp.einsum("nhqd,nhkd->nhqk", qh, kh) * scale
    pattn = jax.nn.softmax(s, axis=-1)
    oh = jnp.einsum("nhqk,nhkd->nhqd", pattn, vh)
    attn = oh.transpose(2, 0, 1, 3).reshape(L, N, E)
    attn = attn @ p["wo"] + p["bo"][0]

    def ln(x, g, b):
        m = x.mean(-1, keepdims=True)
        var = ((x - m) ** 2).mean(-1, keepdims=True)
        return (x - m) / jnp.sqrt(var + 1e-5) * g[0] + b[0]

    h = ln(src + attn, p["g1"], p["beta1"])
    ff = jnp.maximum(h @ p["w1"] + p["bf1"][0], 0.0)
    ff = ff @ p["w2"] + p["bf2"][0]
    return ln(h + ff, p["g2"], p["beta2"])


# -----------------------------------------------------------------------------
# Deterministic synthetic parameters (weights stored transposed: (in, out)).
# -----------------------------------------------------------------------------
def init_params(key, d_model, num_heads, dim_feedforward):
    E, F = d_model, dim_feedforward
    ks = jax.random.split(key, 12)

    def nrm(k, shape, s=0.05):
        return (s * jax.random.normal(k, shape)).astype(jnp.float32)

    return {
        "num_heads": num_heads,
        "wq": nrm(ks[0], (E, E)), "wk": nrm(ks[1], (E, E)), "wv": nrm(ks[2], (E, E)),
        "bq": nrm(ks[3], (1, E)), "bk": nrm(ks[4], (1, E)), "bv": nrm(ks[5], (1, E)),
        "wo": nrm(ks[6], (E, E)), "bo": nrm(ks[7], (1, E)),
        "w1": nrm(ks[8], (E, F)), "bf1": nrm(ks[9], (1, F)),
        "w2": nrm(ks[10], (F, E)), "bf2": nrm(ks[11], (1, E)),
        "g1": jnp.ones((1, E), jnp.float32), "beta1": jnp.zeros((1, E), jnp.float32),
        "g2": jnp.ones((1, E), jnp.float32), "beta2": jnp.zeros((1, E), jnp.float32),
    }


if __name__ == "__main__":
    # Small DETR-like shapes: seq=16, batch=2, d_model=128, heads=4 (Dh=32), ffn=256.
    L, N, E, H, F = 16, 2, 128, 4, 256

    key = jax.random.PRNGKey(0)
    k_src, k_pos, k_par = jax.random.split(key, 3)
    src = jax.random.normal(k_src, (L, N, E), jnp.float32)
    pos = jax.random.normal(k_pos, (L, N, E), jnp.float32)
    params = init_params(k_par, E, H, F)

    ref = reference_forward(src, pos, params)

    # Exact-parity mode (fp32 MXU operands): tight tolerance.
    out_fp32 = jax.block_until_ready(
        transformer_encoder_layer(src, pos, params, mxu_dtype=jnp.float32))
    np.testing.assert_allclose(np.asarray(out_fp32), np.asarray(ref),
                               rtol=1e-4, atol=1e-4)

    # Default fast mode (bf16 MXU operands, fp32 accumulation): loose tolerance.
    out = jax.block_until_ready(transformer_encoder_layer(src, pos, params))
    assert out.shape == (L, N, E)
    np.testing.assert_allclose(np.asarray(out), np.asarray(ref),
                               rtol=2e-2, atol=2e-2)

    print("KERNEL_OK")
</pallas_src>

<mosaic_0001>
module attributes {stable_mosaic.version = 11 : i64} {
  func.func @_attn_kernel(%arg0: i32, %arg1: memref<16x128xf32, #tpu.memory_space<vmem>>, %arg2: memref<16x128xf32, #tpu.memory_space<vmem>>, %arg3: memref<128x256xf32, #tpu.memory_space<vmem>>, %arg4: memref<1x256xf32, #tpu.memory_space<vmem>>, %arg5: memref<128x128xf32, #tpu.memory_space<vmem>>, %arg6: memref<1x128xf32, #tpu.memory_space<vmem>>, %arg7: memref<128x128xf32, #tpu.memory_space<vmem>>, %arg8: memref<1x128xf32, #tpu.memory_space<vmem>>, %arg9: memref<1x128xf32, #tpu.memory_space<vmem>>, %arg10: memref<1x128xf32, #tpu.memory_space<vmem>>, %arg11: memref<16x128xf32, #tpu.memory_space<vmem>>, %arg12: memref<4x16x32xf32, #tpu.memory_space<vmem>>, %arg13: memref<4x16x32xf32, #tpu.memory_space<vmem>>, %arg14: memref<4x16x32xf32, #tpu.memory_space<vmem>>, %arg15: memref<4x16x32xf32, #tpu.memory_space<vmem>>) attributes {dimension_semantics = [#tpu.dimension_semantics<parallel>], iteration_bounds = array<i64: 2>, scalar_prefetch = 0 : i64, scratch_operands = 4 : i64, tpu.core_type = #tpu.core_type<tc>, window_params = [{transform_indices = @transform_0, window_bounds = array<i64: 16, 128>}, {transform_indices = @transform_1, window_bounds = array<i64: 16, 128>}, {pipeline_mode = #tpu.pipeline_mode<synchronous>, transform_indices = @transform_2, window_bounds = array<i64: 128, 256>}, {pipeline_mode = #tpu.pipeline_mode<synchronous>, transform_indices = @transform_3, window_bounds = array<i64: 1, 256>}, {pipeline_mode = #tpu.pipeline_mode<synchronous>, transform_indices = @transform_4, window_bounds = array<i64: 128, 128>}, {pipeline_mode = #tpu.pipeline_mode<synchronous>, transform_indices = @transform_5, window_bounds = array<i64: 1, 128>}, {pipeline_mode = #tpu.pipeline_mode<synchronous>, transform_indices = @transform_6, window_bounds = array<i64: 128, 128>}, {pipeline_mode = #tpu.pipeline_mode<synchronous>, transform_indices = @transform_7, window_bounds = array<i64: 1, 128>}, {pipeline_mode = #tpu.pipeline_mode<synchronous>, transform_indices = @transform_8, window_bounds = array<i64: 1, 128>}, {pipeline_mode = #tpu.pipeline_mode<synchronous>, transform_indices = @transform_9, window_bounds = array<i64: 1, 128>}, {transform_indices = @transform_10, window_bounds = array<i64: 16, 128>}]} {
    %c0 = arith.constant 0 : index
    %c0_0 = arith.constant 0 : index
    %0 = vector.load %arg1[%c0, %c0_0] : memref<16x128xf32, #tpu.memory_space<vmem>>, vector<16x128xf32>
    %c0_1 = arith.constant 0 : index
    %c0_2 = arith.constant 0 : index
    %1 = vector.load %arg2[%c0_1, %c0_2] : memref<16x128xf32, #tpu.memory_space<vmem>>, vector<16x128xf32>
    %2 = arith.addf %0, %1 : vector<16x128xf32>
    %c0_3 = arith.constant 0 : index
    %c0_4 = arith.constant 0 : index
    %3 = vector.load %arg3[%c0_3, %c0_4] : memref<128x256xf32, #tpu.memory_space<vmem>>, vector<128x256xf32>
    %cst = arith.constant dense<0.000000e+00> : vector<16x256xf32>
    %4 = tpu.matmul %2, %3, %cst {dimension_numbers = #tpu.dot_dimension_numbers<[1], [0], [0], [1], [0, 0, 1, 1], [], []>} : vector<16x128xf32>, vector<128x256xf32>, vector<16x256xf32> -> vector<16x256xf32>
    %c0_5 = arith.constant 0 : index
    %c0_6 = arith.constant 0 : index
    %5 = vector.load %arg4[%c0_5, %c0_6] : memref<1x256xf32, #tpu.memory_space<vmem>>, vector<1x256xf32>
    %6 = vector.broadcast %5 : vector<1x256xf32> to vector<16x256xf32>
    %7 = arith.addf %4, %6 : vector<16x256xf32>
    %c0_7 = arith.constant 0 : index
    %c0_8 = arith.constant 0 : index
    %8 = vector.load %arg5[%c0_7, %c0_8] : memref<128x128xf32, #tpu.memory_space<vmem>>, vector<128x128xf32>
    %cst_9 = arith.constant dense<0.000000e+00> : vector<16x128xf32>
    %9 = tpu.matmul %0, %8, %cst_9 {dimension_numbers = #tpu.dot_dimension_numbers<[1], [0], [0], [1], [0, 0, 1, 1], [], []>} : vector<16x128xf32>, vector<128x128xf32>, vector<16x128xf32> -> vector<16x128xf32>
    %c0_10 = arith.constant 0 : index
    %c0_11 = arith.constant 0 : index
    %10 = vector.load %arg6[%c0_10, %c0_11] : memref<1x128xf32, #tpu.memory_space<vmem>>, vector<1x128xf32>
    %11 = vector.broadcast %10 : vector<1x128xf32> to vector<16x128xf32>
    %12 = arith.addf %9, %11 : vector<16x128xf32>
    %13 = vector.extract_strided_slice %7 {offsets = [0, 0], sizes = [16, 32], strides = [1, 1]} : vector<16x256xf32> to vector<16x32xf32>
    %c0_12 = arith.constant 0 : index
    %c0_13 = arith.constant 0 : index
    %c0_14 = arith.constant 0 : index
    %14 = vector.load %arg12[%c0_12, %c0_13, %c0_14] : memref<4x16x32xf32, #tpu.memory_space<vmem>>, vector<1x16x32xf32>
    %15 = vector.shape_cast %14 : vector<1x16x32xf32> to vector<16x32xf32>
    %16 = vector.shape_cast %13 : vector<16x32xf32> to vector<1x16x32xf32>
    tpu.vector_store %arg12[%c0_12, %c0_13, %c0_14], %16 {strides = array<i32>} : memref<4x16x32xf32, #tpu.memory_space<vmem>>, vector<1x16x32xf32>,
    %17 = vector.extract_strided_slice %7 {offsets = [0, 128], sizes = [16, 32], strides = [1, 1]} : vector<16x256xf32> to vector<16x32xf32>
    %c0_15 = arith.constant 0 : index
    %c0_16 = arith.constant 0 : index
    %c0_17 = arith.constant 0 : index
    %18 = vector.load %arg13[%c0_15, %c0_16, %c0_17] : memref<4x16x32xf32, #tpu.memory_space<vmem>>, vector<1x16x32xf32>
    %19 = vector.shape_cast %18 : vector<1x16x32xf32> to vector<16x32xf32>
    %20 = vector.shape_cast %17 : vector<16x32xf32> to vector<1x16x32xf32>
    tpu.vector_store %arg13[%c0_15, %c0_16, %c0_17], %20 {strides = array<i32>} : memref<4x16x32xf32, #tpu.memory_space<vmem>>, vector<1x16x32xf32>,
    %21 = vector.extract_strided_slice %12 {offsets = [0, 0], sizes = [16, 32], strides = [1, 1]} : vector<16x128xf32> to vector<16x32xf32>
    %c0_18 = arith.constant 0 : index
    %c0_19 = arith.constant 0 : index
    %c0_20 = arith.constant 0 : index
    %22 = vector.load %arg14[%c0_18, %c0_19, %c0_20] : memref<4x16x32xf32, #tpu.memory_space<vmem>>, vector<1x16x32xf32>
    %23 = vector.shape_cast %22 : vector<1x16x32xf32> to vector<16x32xf32>
    %24 = vector.shape_cast %21 : vector<16x32xf32> to vector<1x16x32xf32>
    tpu.vector_store %arg14[%c0_18, %c0_19, %c0_20], %24 {strides = array<i32>} : memref<4x16x32xf32, #tpu.memory_space<vmem>>, vector<1x16x32xf32>,
    %25 = vector.extract_strided_slice %7 {offsets = [0, 32], sizes = [16, 32], strides = [1, 1]} : vector<16x256xf32> to vector<16x32xf32>
    %c1 = arith.constant 1 : index
    %c0_21 = arith.constant 0 : index
    %c0_22 = arith.constant 0 : index
    %26 = vector.load %arg12[%c1, %c0_21, %c0_22] : memref<4x16x32xf32, #tpu.memory_space<vmem>>, vector<1x16x32xf32>
    %27 = vector.shape_cast %26 : vector<1x16x32xf32> to vector<16x32xf32>
    %28 = vector.shape_cast %25 : vector<16x32xf32> to vector<1x16x32xf32>
    tpu.vector_store %arg12[%c1, %c0_21, %c0_22], %28 {strides = array<i32>} : memref<4x16x32xf32, #tpu.memory_space<vmem>>, vector<1x16x32xf32>,
    %29 = vector.extract_strided_slice %7 {offsets = [0, 160], sizes = [16, 32], strides = [1, 1]} : vector<16x256xf32> to vector<16x32xf32>
    %c1_23 = arith.constant 1 : index
    %c0_24 = arith.constant 0 : index
    %c0_25 = arith.constant 0 : index
    %30 = vector.load %arg13[%c1_23, %c0_24, %c0_25] : memref<4x16x32xf32, #tpu.memory_space<vmem>>, vector<1x16x32xf32>
    %31 = vector.shape_cast %30 : vector<1x16x32xf32> to vector<16x32xf32>
    %32 = vector.shape_cast %29 : vector<16x32xf32> to vector<1x16x32xf32>
    tpu.vector_store %arg13[%c1_23, %c0_24, %c0_25], %32 {strides = array<i32>} : memref<4x16x32xf32, #tpu.memory_space<vmem>>, vector<1x16x32xf32>,
    %33 = vector.extract_strided_slice %12 {offsets = [0, 32], sizes = [16, 32], strides = [1, 1]} : vector<16x128xf32> to vector<16x32xf32>
    %c1_26 = arith.constant 1 : index
    %c0_27 = arith.constant 0 : index
    %c0_28 = arith.constant 0 : index
    %34 = vector.load %arg14[%c1_26, %c0_27, %c0_28] : memref<4x16x32xf32, #tpu.memory_space<vmem>>, vector<1x16x32xf32>
    %35 = vector.shape_cast %34 : vector<1x16x32xf32> to vector<16x32xf32>
    %36 = vector.shape_cast %33 : vector<16x32xf32> to vector<1x16x32xf32>
    tpu.vector_store %arg14[%c1_26, %c0_27, %c0_28], %36 {strides = array<i32>} : memref<4x16x32xf32, #tpu.memory_space<vmem>>, vector<1x16x32xf32>,
    %37 = vector.extract_strided_slice %7 {offsets = [0, 64], sizes = [16, 32], strides = [1, 1]} : vector<16x256xf32> to vector<16x32xf32>
    %c2 = arith.constant 2 : index
    %c0_29 = arith.constant 0 : index
    %c0_30 = arith.constant 0 : index
    %38 = vector.load %arg12[%c2, %c0_29, %c0_30] : memref<4x16x32xf32, #tpu.memory_space<vmem>>, vector<1x16x32xf32>
    %39 = vector.shape_cast %38 : vector<1x16x32xf32> to vector<16x32xf32>
    %40 = vector.shape_cast %37 : vector<16x32xf32> to vector<1x16x32xf32>
    tpu.vector_store %arg12[%c2, %c0_29, %c0_30], %40 {strides = array<i32>} : memref<4x16x32xf32, #tpu.memory_space<vmem>>, vector<1x16x32xf32>,
    %41 = vector.extract_strided_slice %7 {offsets = [0, 192], sizes = [16, 32], strides = [1, 1]} : vector<16x256xf32> to vector<16x32xf32>
    %c2_31 = arith.constant 2 : index
    %c0_32 = arith.constant 0 : index
    %c0_33 = arith.constant 0 : index
    %42 = vector.load %arg13[%c2_31, %c0_32, %c0_33] : memref<4x16x32xf32, #tpu.memory_space<vmem>>, vector<1x16x32xf32>
    %43 = vector.shape_cast %42 : vector<1x16x32xf32> to vector<16x32xf32>
    %44 = vector.shape_cast %41 : vector<16x32xf32> to vector<1x16x32xf32>
    tpu.vector_store %arg13[%c2_31, %c0_32, %c0_33], %44 {strides = array<i32>} : memref<4x16x32xf32, #tpu.memory_space<vmem>>, vector<1x16x32xf32>,
    %45 = vector.extract_strided_slice %12 {offsets = [0, 64], sizes = [16, 32], strides = [1, 1]} : vector<16x128xf32> to vector<16x32xf32>
    %c2_34 = arith.constant 2 : index
    %c0_35 = arith.constant 0 : index
    %c0_36 = arith.constant 0 : index
    %46 = vector.load %arg14[%c2_34, %c0_35, %c0_36] : memref<4x16x32xf32, #tpu.memory_space<vmem>>, vector<1x16x32xf32>
    %47 = vector.shape_cast %46 : vector<1x16x32xf32> to vector<16x32xf32>
    %48 = vector.shape_cast %45 : vector<16x32xf32> to vector<1x16x32xf32>
    tpu.vector_store %arg14[%c2_34, %c0_35, %c0_36], %48 {strides = array<i32>} : memref<4x16x32xf32, #tpu.memory_space<vmem>>, vector<1x16x32xf32>,
    %49 = vector.extract_strided_slice %7 {offsets = [0, 96], sizes = [16, 32], strides = [1, 1]} : vector<16x256xf32> to vector<16x32xf32>
    %c3 = arith.constant 3 : index
    %c0_37 = arith.constant 0 : index
    %c0_38 = arith.constant 0 : index
    %50 = vector.load %arg12[%c3, %c0_37, %c0_38] : memref<4x16x32xf32, #tpu.memory_space<vmem>>, vector<1x16x32xf32>
    %51 = vector.shape_cast %50 : vector<1x16x32xf32> to vector<16x32xf32>
    %52 = vector.shape_cast %49 : vector<16x32xf32> to vector<1x16x32xf32>
    tpu.vector_store %arg12[%c3, %c0_37, %c0_38], %52 {strides = array<i32>} : memref<4x16x32xf32, #tpu.memory_space<vmem>>, vector<1x16x32xf32>,
    %53 = vector.extract_strided_slice %7 {offsets = [0, 224], sizes = [16, 32], strides = [1, 1]} : vector<16x256xf32> to vector<16x32xf32>
    %c3_39 = arith.constant 3 : index
    %c0_40 = arith.constant 0 : index
    %c0_41 = arith.constant 0 : index
    %54 = vector.load %arg13[%c3_39, %c0_40, %c0_41] : memref<4x16x32xf32, #tpu.memory_space<vmem>>, vector<1x16x32xf32>
    %55 = vector.shape_cast %54 : vector<1x16x32xf32> to vector<16x32xf32>
    %56 = vector.shape_cast %53 : vector<16x32xf32> to vector<1x16x32xf32>
    tpu.vector_store %arg13[%c3_39, %c0_40, %c0_41], %56 {strides = array<i32>} : memref<4x16x32xf32, #tpu.memory_space<vmem>>, vector<1x16x32xf32>,
    %57 = vector.extract_strided_slice %12 {offsets = [0, 96], sizes = [16, 32], strides = [1, 1]} : vector<16x128xf32> to vector<16x32xf32>
    %c3_42 = arith.constant 3 : index
    %c0_43 = arith.constant 0 : index
    %c0_44 = arith.constant 0 : index
    %58 = vector.load %arg14[%c3_42, %c0_43, %c0_44] : memref<4x16x32xf32, #tpu.memory_space<vmem>>, vector<1x16x32xf32>
    %59 = vector.shape_cast %58 : vector<1x16x32xf32> to vector<16x32xf32>
    %60 = vector.shape_cast %57 : vector<16x32xf32> to vector<1x16x32xf32>
    tpu.vector_store %arg14[%c3_42, %c0_43, %c0_44], %60 {strides = array<i32>} : memref<4x16x32xf32, #tpu.memory_space<vmem>>, vector<1x16x32xf32>,
    %c0_i32 = arith.constant 0 : i32
    %c4_i32 = arith.constant 4 : i32
    %61 = arith.addi %c0_i32, %c4_i32 : i32
    %c1_i32 = arith.constant 1 : i32
    scf.for %arg16 = %c0_i32 to %61 step %c1_i32  : i32 {
      %100 = arith.index_cast %arg16 : i32 to index
      %c0_74 = arith.constant 0 : index
      %c0_75 = arith.constant 0 : index
      %101 = vector.load %arg12[%100, %c0_74, %c0_75] : memref<4x16x32xf32, #tpu.memory_space<vmem>>, vector<1x16x32xf32>
      %102 = vector.shape_cast %101 : vector<1x16x32xf32> to vector<16x32xf32>
      %103 = arith.index_cast %arg16 : i32 to index
      %c0_76 = arith.constant 0 : index
      %c0_77 = arith.constant 0 : index
      %104 = vector.load %arg13[%103, %c0_76, %c0_77] : memref<4x16x32xf32, #tpu.memory_space<vmem>>, vector<1x16x32xf32>
      %105 = vector.shape_cast %104 : vector<1x16x32xf32> to vector<16x32xf32>
      %106 = arith.index_cast %arg16 : i32 to index
      %c0_78 = arith.constant 0 : index
      %c0_79 = arith.constant 0 : index
      %107 = vector.load %arg14[%106, %c0_78, %c0_79] : memref<4x16x32xf32, #tpu.memory_space<vmem>>, vector<1x16x32xf32>
      %108 = vector.shape_cast %107 : vector<1x16x32xf32> to vector<16x32xf32>
      %cst_80 = arith.constant dense<0.000000e+00> : vector<16x16xf32>
      %109 = tpu.matmul %102, %105, %cst_80 {dimension_numbers = #tpu.dot_dimension_numbers<[1], [1], [0], [0], [0, 0, 1, 0], [], []>} : vector<16x32xf32>, vector<16x32xf32>, vector<16x16xf32> -> vector<16x16xf32>
      %cst_81 = arith.constant dense<0xFF800000> : vector<16xf32>
      %110 = vector.multi_reduction <maximumf>, %109, %cst_81 [1] : vector<16x16xf32> to vector<16xf32>
      %111 = vector.shape_cast %110 : vector<16xf32> to vector<16x1xf32>
      %112 = vector.broadcast %111 : vector<16x1xf32> to vector<16x16xf32>
      %113 = arith.subf %109, %112 : vector<16x16xf32>
      %114 = math.exp %113 : vector<16x16xf32>
      %cst_82 = arith.constant dense<0.000000e+00> : vector<16xf32>
      %115 = vector.multi_reduction <add>, %114, %cst_82 [1] : vector<16x16xf32> to vector<16xf32>
      %116 = vector.shape_cast %115 : vector<16xf32> to vector<16x1xf32>
      %cst_83 = arith.constant dense<0.000000e+00> : vector<16x32xf32>
      %117 = tpu.matmul %114, %108, %cst_83 {dimension_numbers = #tpu.dot_dimension_numbers<[1], [0], [0], [1], [0, 0, 1, 1], [], []>} : vector<16x16xf32>, vector<16x32xf32>, vector<16x32xf32> -> vector<16x32xf32>
      %118 = tpu.reciprocal %116 : vector<16x1xf32> -> vector<16x1xf32>
      %119 = vector.broadcast %118 : vector<16x1xf32> to vector<16x32xf32>
      %120 = arith.mulf %117, %119 : vector<16x32xf32>
      %121 = arith.index_cast %arg16 : i32 to index
      %c0_84 = arith.constant 0 : index
      %c0_85 = arith.constant 0 : index
      %122 = vector.load %arg15[%121, %c0_84, %c0_85] : memref<4x16x32xf32, #tpu.memory_space<vmem>>, vector<1x16x32xf32>
      %123 = vector.shape_cast %122 : vector<1x16x32xf32> to vector<16x32xf32>
      %124 = vector.shape_cast %120 : vector<16x32xf32> to vector<1x16x32xf32>
      tpu.vector_store %arg15[%121, %c0_84, %c0_85], %124 {strides = array<i32>} : memref<4x16x32xf32, #tpu.memory_space<vmem>>, vector<1x16x32xf32>,
    }
    %c4_i32_45 = arith.constant 4 : i32
    %c0_46 = arith.constant 0 : index
    %c0_47 = arith.constant 0 : index
    %c0_48 = arith.constant 0 : index
    %62 = vector.load %arg15[%c0_46, %c0_47, %c0_48] : memref<4x16x32xf32, #tpu.memory_space<vmem>>, vector<1x16x32xf32>
    %63 = vector.shape_cast %62 : vector<1x16x32xf32> to vector<16x32xf32>
    %c1_49 = arith.constant 1 : index
    %c0_50 = arith.constant 0 : index
    %c0_51 = arith.constant 0 : index
    %64 = vector.load %arg15[%c1_49, %c0_50, %c0_51] : memref<4x16x32xf32, #tpu.memory_space<vmem>>, vector<1x16x32xf32>
    %65 = vector.shape_cast %64 : vector<1x16x32xf32> to vector<16x32xf32>
    %c2_52 = arith.constant 2 : index
    %c0_53 = arith.constant 0 : index
    %c0_54 = arith.constant 0 : index
    %66 = vector.load %arg15[%c2_52, %c0_53, %c0_54] : memref<4x16x32xf32, #tpu.memory_space<vmem>>, vector<1x16x32xf32>
    %67 = vector.shape_cast %66 : vector<1x16x32xf32> to vector<16x32xf32>
    %c3_55 = arith.constant 3 : index
    %c0_56 = arith.constant 0 : index
    %c0_57 = arith.constant 0 : index
    %68 = vector.load %arg15[%c3_55, %c0_56, %c0_57] : memref<4x16x32xf32, #tpu.memory_space<vmem>>, vector<1x16x32xf32>
    %69 = vector.shape_cast %68 : vector<1x16x32xf32> to vector<16x32xf32>
    %70 = tpu.concatenate %63, %65, %67, %69 in 1 : vector<16x32xf32>, vector<16x32xf32>, vector<16x32xf32>, vector<16x32xf32> -> vector<16x128xf32>
    %c0_58 = arith.constant 0 : index
    %c0_59 = arith.constant 0 : index
    %71 = vector.load %arg7[%c0_58, %c0_59] : memref<128x128xf32, #tpu.memory_space<vmem>>, vector<128x128xf32>
    %cst_60 = arith.constant dense<0.000000e+00> : vector<16x128xf32>
    %72 = tpu.matmul %70, %71, %cst_60 {dimension_numbers = #tpu.dot_dimension_numbers<[1], [0], [0], [1], [0, 0, 1, 1], [], []>} : vector<16x128xf32>, vector<128x128xf32>, vector<16x128xf32> -> vector<16x128xf32>
    %c0_61 = arith.constant 0 : index
    %c0_62 = arith.constant 0 : index
    %73 = vector.load %arg8[%c0_61, %c0_62] : memref<1x128xf32, #tpu.memory_space<vmem>>, vector<1x128xf32>
    %74 = vector.broadcast %73 : vector<1x128xf32> to vector<16x128xf32>
    %75 = arith.addf %72, %74 : vector<16x128xf32>
    %76 = arith.addf %0, %75 : vector<16x128xf32>
    %cst_63 = arith.constant dense<0.000000e+00> : vector<16xf32>
    %77 = vector.multi_reduction <add>, %76, %cst_63 [1] : vector<16x128xf32> to vector<16xf32>
    %78 = vector.shape_cast %77 : vector<16xf32> to vector<16x1xf32>
    %cst_64 = arith.constant 1.280000e+02 : f32
    %79 = vector.broadcast %cst_64 : f32 to vector<16x1xf32>
    %80 = arith.divf %78, %79 : vector<16x1xf32>
    %81 = vector.broadcast %80 : vector<16x1xf32> to vector<16x128xf32>
    %82 = arith.subf %76, %81 : vector<16x128xf32>
    %83 = arith.mulf %82, %82 : vector<16x128xf32>
    %cst_65 = arith.constant dense<0.000000e+00> : vector<16xf32>
    %84 = vector.multi_reduction <add>, %83, %cst_65 [1] : vector<16x128xf32> to vector<16xf32>
    %85 = vector.shape_cast %84 : vector<16xf32> to vector<16x1xf32>
    %cst_66 = arith.constant 1.280000e+02 : f32
    %86 = vector.broadcast %cst_66 : f32 to vector<16x1xf32>
    %87 = arith.divf %85, %86 : vector<16x1xf32>
    %cst_67 = arith.constant 9.99999974E-6 : f32
    %88 = vector.broadcast %cst_67 : f32 to vector<16x1xf32>
    %89 = arith.addf %87, %88 : vector<16x1xf32>
    %90 = math.rsqrt %89 : vector<16x1xf32>
    %91 = vector.broadcast %90 : vector<16x1xf32> to vector<16x128xf32>
    %92 = arith.mulf %82, %91 : vector<16x128xf32>
    %c0_68 = arith.constant 0 : index
    %c0_69 = arith.constant 0 : index
    %93 = vector.load %arg9[%c0_68, %c0_69] : memref<1x128xf32, #tpu.memory_space<vmem>>, vector<1x128xf32>
    %94 = vector.broadcast %93 : vector<1x128xf32> to vector<16x128xf32>
    %95 = arith.mulf %92, %94 : vector<16x128xf32>
    %c0_70 = arith.constant 0 : index
    %c0_71 = arith.constant 0 : index
    %96 = vector.load %arg10[%c0_70, %c0_71] : memref<1x128xf32, #tpu.memory_space<vmem>>, vector<1x128xf32>
    %97 = vector.broadcast %96 : vector<1x128xf32> to vector<16x128xf32>
    %98 = arith.addf %95, %97 : vector<16x128xf32>
    %c0_72 = arith.constant 0 : index
    %c0_73 = arith.constant 0 : index
    %99 = vector.load %arg11[%c0_72, %c0_73] : memref<16x128xf32, #tpu.memory_space<vmem>>, vector<16x128xf32>
    tpu.vector_store %arg11[%c0_72, %c0_73], %98 {strides = array<i32>} : memref<16x128xf32, #tpu.memory_space<vmem>>, vector<16x128xf32>,
    return
  }
  func.func @transform_0(%arg0: i32) -> (i32, i32) {
    %c0_i32 = arith.constant 0 : i32
    %c0_i32_0 = arith.constant 0 : i32
    return %c0_i32, %arg0 : i32, i32
  }
  func.func @transform_1(%arg0: i32) -> (i32, i32) {
    %c0_i32 = arith.constant 0 : i32
    %c0_i32_0 = arith.constant 0 : i32
    return %c0_i32, %arg0 : i32, i32
  }
  func.func @transform_2(%arg0: i32) -> (i32, i32) {
    %c0_i32 = arith.constant 0 : i32
    %c0_i32_0 = arith.constant 0 : i32
    %c0_i32_1 = arith.constant 0 : i32
    return %c0_i32, %c0_i32_0 : i32, i32
  }
  func.func @transform_3(%arg0: i32) -> (i32, i32) {
    %c0_i32 = arith.constant 0 : i32
    %c0_i32_0 = arith.constant 0 : i32
    %c0_i32_1 = arith.constant 0 : i32
    return %c0_i32, %c0_i32_0 : i32, i32
  }
  func.func @transform_4(%arg0: i32) -> (i32, i32) {
    %c0_i32 = arith.constant 0 : i32
    %c0_i32_0 = arith.constant 0 : i32
    %c0_i32_1 = arith.constant 0 : i32
    return %c0_i32, %c0_i32_0 : i32, i32
  }
  func.func @transform_5(%arg0: i32) -> (i32, i32) {
    %c0_i32 = arith.constant 0 : i32
    %c0_i32_0 = arith.constant 0 : i32
    %c0_i32_1 = arith.constant 0 : i32
    return %c0_i32, %c0_i32_0 : i32, i32
  }
  func.func @transform_6(%arg0: i32) -> (i32, i32) {
    %c0_i32 = arith.constant 0 : i32
    %c0_i32_0 = arith.constant 0 : i32
    %c0_i32_1 = arith.constant 0 : i32
    return %c0_i32, %c0_i32_0 : i32, i32
  }
  func.func @transform_7(%arg0: i32) -> (i32, i32) {
    %c0_i32 = arith.constant 0 : i32
    %c0_i32_0 = arith.constant 0 : i32
    %c0_i32_1 = arith.constant 0 : i32
    return %c0_i32, %c0_i32_0 : i32, i32
  }
  func.func @transform_8(%arg0: i32) -> (i32, i32) {
    %c0_i32 = arith.constant 0 : i32
    %c0_i32_0 = arith.constant 0 : i32
    %c0_i32_1 = arith.constant 0 : i32
    return %c0_i32, %c0_i32_0 : i32, i32
  }
  func.func @transform_9(%arg0: i32) -> (i32, i32) {
    %c0_i32 = arith.constant 0 : i32
    %c0_i32_0 = arith.constant 0 : i32
    %c0_i32_1 = arith.constant 0 : i32
    return %c0_i32, %c0_i32_0 : i32, i32
  }
  func.func @transform_10(%arg0: i32) -> (i32, i32) {
    %c0_i32 = arith.constant 0 : i32
    %c0_i32_0 = arith.constant 0 : i32
    return %c0_i32, %arg0 : i32, i32
  }
}

</mosaic_0001>

<bundles_post_ra>
// kernel: tpu_custom_call.1
= control target key start
LH: loop header
LB: loop body
LE: loop exit
PB: predicated region body
PF: predicated region fallthrough
CT: control target
= control target key end

     0   :  { %s2290_s0 = inlined_call_operand.hbm [shape: f32[16,256], index: 0, kind: input, shape index: {}]   ;;  %s2291_s1 = inlined_call_operand.hbm [shape: f32[16,256], index: 1, kind: input, shape index: {}]   ;;  %s2292_s2 = inlined_call_operand.hbm [shape: f32[128,256], index: 2, kind: input, shape index: {}]   ;;  %s2293_s3 = inlined_call_operand.vmem [shape: f32[1,256], index: 3, kind: input, shape index: {}]   ;;  %s2294_s4 = inlined_call_operand.hbm [shape: f32[128,128], index: 4, kind: input, shape index: {}]   ;;  %s2295_s5 = inlined_call_operand.vmem [shape: f32[1,128], index: 5, kind: input, shape index: {}]   ;;  %s2296_s6 = inlined_call_operand.hbm [shape: f32[128,128], index: 6, kind: input, shape index: {}]   ;;  %s2297_s7 = inlined_call_operand.vmem [shape: f32[1,128], index: 7, kind: input, shape index: {}]   ;;  %s2298_s8 = inlined_call_operand.vmem [shape: f32[1,128], index: 8, kind: input, shape index: {}]   ;;  %s2299_s9 = inlined_call_operand.vmem [shape: f32[1,128], index: 9, kind: input, shape index: {}]   ;;  %s2300_s10 = inlined_call_operand.hbm [shape: f32[16,256], index: 10, kind: output, shape index: {}]  }
   0x1   :  { %2316 = sst [smem:[#allocation26_spill]] %s2290_s0 }
   0x2   :  { %2317 = sst [smem:[#allocation27_spill]] %s2292_s2 }
   0x3   :  { %2318 = sst [smem:[#allocation28_spill]] %s2294_s4 }
   0x4   :  { %2319 = sst [smem:[#allocation29_spill]] %s2296_s6 }
   0x5   :  { %2320 = sst [smem:[#allocation30_spill]] %s2300_s10 }
   0x6   :  { %15 = vsyncpa [#allocation7], 0 }
   0x7   :  { %17 = vsyncpa [#allocation7 + $0x1], 0 }
   0x8   :  { %18 = vsyncpa [#allocation10], 0 }
   0x9   :  { %20 = vsyncpa [#allocation10 + $0x1], 0 }
   0xa   :  { %21 = vsyncpa [#allocation13], 0 }
   0xb   :  { %22 = vsyncpa [#allocation8], 0 }
   0xc   :  { %24 = vsyncpa [#allocation8 + $0x1], 0  ;;  %s1904_s13 = smov 0   ;;  %s1906_s14 = smov 0  }
   0xd   :  { %s1908_s15 = smov 0   ;;  %s1910_s16 = smov 0  }
   0xe LB: > { %2321 = sst [smem:[#allocation21_spill]] %s1814_s13  ;;  %s1925_s17 = sadd.s32 4294967295, %s1826_s16   ;;  %s1826_s16 = sphi %s1910_s16, %s2351_s16   ;;  %s1822_s15 = sphi %s1908_s15, %s2353_s15   ;;  %s1818_s14 = sphi %s1906_s14, %s2355_s14   ;;  %s1814_s13 = sphi %s1904_s13, %s2354_s13  }
   0xf   : > { %2322 = sst [smem:[#allocation22_spill]] %s1822_s15  ;;  %s1324_s18 = sadd.s32 4294967294, %s1826_s16  }
  0x10   : > { %s1929_s19 = sadd.s32 1, %s1826_s16   ;;  %s37_s20 = sadd.s32 1, %s1822_s15 }
  0x11   : > { %2323 = sst [smem:[#allocation23_spill]] %s1929_s19  ;;  %s34_s21 = ssub.s32 %s1826_s16, %s1929_s19 }
  0x12   : > { %p44_p0 = scmp.ne.s32.totalorder %s1822_s15, %s1818_s14  ;;  %p35_p1 = scmp.eq.s32.totalorder %s34_s21, 0 }
  0x13   : > { %p45_p2 = scmp.eq.s32.totalorder %s1826_s16, 0  ;;  %p50_p3 = scmp.ne.s32.totalorder %s1818_s14, %s1814_s13 }
  0x14   : > { %p2302_p4 = scmp.eq.s32.totalorder %s1925_s17, 0  ;;  %p268_p7 = scmp.eq.s32.totalorder %s1925_s17, 1 }
  0x15   : > { %s1941_s22 = scalar_select %p35_p1, %s1822_s15, %s37_s20  }
  0x16   : > { %p1943_p5 = por %p45_p2, %p44_p0  ;;  %p1949_p6 = por %p2302_p4, %p50_p3 }
  0x17   : > { %2324 = sst [smem:[#allocation24_spill]] %s1941_s22  ;;  %p274_p8 = scmp.eq.s32.totalorder %s1324_s18, 1 }
  0x18   : > { %s2326_s24 = scalar_select %p1949_p6, 1, 0 }
  0x19   : > { %p1325_p9 = scmp.ge.s32.totalorder %s1826_s16, 1  ;;  %p281_p10 = scmp.lt.s32.totalorder %s1826_s16, 3 }
  0x1a   : > { %p1956_p11 = por %p268_p7, %p44_p0  ;;  %p1960_p12 = por %p274_p8, %p50_p3 }
  0x1b   : > { %p1964_p13 = pnand %p1325_p9, %p281_p10  ;;  %s1832_s28 = smov [#allocation11]  }
  0x1c   : > { %s2327_s25 = scalar_select %p1956_p11, 1, 0 }
  0x1d   : > { %s2328_s26 = scalar_select %p1960_p12, 1, 0 }
  0x1e   : > { %p1502_p1 = pneg %p1964_p13  ;;  %s293_s29 = sshll.u32 %s1832_s28, 4  ;;  %s294_s29 = int_to_ptr.vmem [resolvable:$true] %s293_s29 }
  0x1f   : > { %2329 = sst [smem:[#allocation25_spill]] %s2328_s26  ;;  %p1526_p3 = scmp.lt.s32.totalorder %s1826_s16, 2 }
  0x20   : > { %p1972_p2 = pnand %p1502_p1, %p2302_p4  ;;  %s1833_s11 = smov [#allocation12]  }
  0x21   : > { %s309_s12 = sshll.u32 %s1833_s11, 4  ;;  %s1623_s18 = scalar_lea.vmem %s294_s29, 4096  ;;  %s310_s12 = int_to_ptr.vmem [resolvable:$true] %s309_s12 }
  0x22   : > { %p1614_p7 = pneg %p1972_p2  ;;  %p1624_p8 = scmp.ne.s32.totalorder %s294_s29, %s1623_s18 }
  0x23   : > { %p1631_p12 = scmp.lt.s32.totalorder %s294_s29, %s294_s29  ;;  %p1632_p11 = scmp.lt.s32.totalorder %s1623_s18, %s1623_s18 }
  0x24   : > { %p1626_p9 = pnand %p1624_p8, %p1614_p7 }
  0x25   : > { %p1633_p1 = por %p1632_p11, %p1631_p12 }
  0x26   : > { %p1627_p10 = pneg %p1626_p9 }
  0x28   : > { %p1634_p4 = pnand %p1633_p1, %p1627_p10 }
  0x2a   : > { %1637 = shalt.err (!%p1634_p4)
}
  0x2b   : > { %s2303_s20 = smov 256   ;;  %s1835_s21 = smov 16  }
  0x2c   : > { %s2332_s2 = sld [smem:[#allocation27_spill]]  ;;  %p1994_p8 = pnand %p1526_p3, %p1943_p5 }
  0x2d   : > { %s1649_s22 = scalar_lea.vmem %s310_s12, 2048  ;;  %p1657_p9 = scmp.lt.s32.totalorder %s310_s12, %s310_s12 }
  0x2e   : > { %p1650_p4 = scmp.ne.s32.totalorder %s310_s12, %s1649_s22  ;;  %p1658_p10 = scmp.lt.s32.totalorder %s1649_s22, %s1649_s22 }
  0x30   : > { %p1652_p11 = pnand %p1650_p4, %p1614_p7  ;;  %p1659_p1 = por %p1658_p10, %p1657_p9 }
  0x32   : > { %1505 = dma.hbm_to_vmem [thread:$0]  (!%p1972_p2), %s2332_s2, 4096, %s294_s29, [#allocation10], %s2303_s20, %s2303_s20, %s1835_s21  }
  0x33   : > { %p1653_p12 = pneg %p1652_p11 }
  0x35   : > { %p1660_p0 = pnand %p1659_p1, %p1653_p12 }
  0x37   : > { %1663 = shalt.err (!%p1660_p0)
}
  0x38   : > { %s2308_s28 = smov 128   ;;  %s2310_s23 = smov 8  }
  0x39   : > { %s2334_s4 = sld [smem:[#allocation28_spill]]  ;;  %s1838_s11 = smov [#allocation14]  }
  0x3a   : > { %s325_s20 = sshll.u32 %s1838_s11, 4  ;;  %s348_s2 = sand.u32 1, %s1822_s15   ;;  %s326_s20 = int_to_ptr.vmem [resolvable:$true] %s325_s20 }
  0x3b   : > { %s1675_s22 = scalar_lea.vmem %s326_s20, 2048  ;;  %p1683_p4 = scmp.lt.s32.totalorder %s326_s20, %s326_s20 }
  0x3c   : > { %p1676_p5 = scmp.ne.s32.totalorder %s326_s20, %s1675_s22  ;;  %p1684_p11 = scmp.lt.s32.totalorder %s1675_s22, %s1675_s22 }
  0x3e   : > { %p1678_p0 = pnand %p1676_p5, %p1614_p7  ;;  %p1685_p12 = por %p1684_p11, %p1683_p4 }
  0x3f   : > { %1508 = dma.hbm_to_vmem [thread:$0]  (!%p1972_p2), %s2334_s4, 2048, %s310_s12, [#allocation13], %s2308_s28, %s2308_s28, %s2310_s23  }
  0x40   : > { %p1679_p3 = pneg %p1678_p0 }
  0x42   : > { %p1686_p9 = pnand %p1685_p12, %p1679_p3 }
  0x44   : > { %1689 = shalt.err (!%p1686_p9)
}
  0x45   : > { %s2335_s6 = sld [smem:[#allocation29_spill]]  ;;  %s2021_s21 = sshll.u32 %s348_s2, 4 }
  0x46   : > { %s1331_s11 = sshll.u32 %s1826_s16, 7  ;;  %s2336_s0 = sld [smem:[#allocation26_spill]] }
  0x47   : > { %s352_s30 = scalar_lea.vmem [#allocation6], %s2021_s21  ;;  %p1692_p7 = pneg %p1994_p8 }
  0x48   : > { %s358_s19 = sshll.u32 %s352_s30, 4  ;;  %s2030_s19 = int_to_ptr.vmem [resolvable:$true] %s358_s19 }
  0x4b   : > { %1511 = dma.hbm_to_vmem [thread:$0]  (!%p1972_p2), %s2335_s6, 2048, %s326_s20, [#allocation13], %s2308_s28, %s2308_s28, %s2310_s23  }
  0x4c   : > { %s2027_s15 = scalar_lea.hbm %s2336_s0, %s1331_s11  ;;  %s2035_s20 = scalar_lea.hbm %s2291_s1, %s1331_s11 }
  0x4d   : > { %s2037_s28 = scalar_lea.sflag [#allocation7], %s348_s2  ;;  %s1690_s23 = scalar_lea.hbm %s2027_s15, 256 }
  0x4e   : > { %p1691_p2 = scmp.ne.s32.totalorder %s2027_s15, %s1690_s23  ;;  %s1695_s30 = scalar_lea.hbm %s2336_s0, 512 }
  0x4f   : > { %p1696_p5 = scmp.lt.s32.totalorder %s2027_s15, %s2336_s0  ;;  %p1697_p0 = scmp.lt.s32.totalorder %s1695_s30, %s1690_s23 }
  0x50   : > { %p1693_p10 = pnand %p1692_p7, %p1691_p2 }
  0x51   : > { %p1698_p3 = por %p1697_p0, %p1696_p5 }
  0x52   : > { %p1694_p1 = pneg %p1693_p10 }
  0x54   : > { %p1699_p4 = pnand %p1698_p3, %p1694_p1 }
  0x56   : > { %1702 = shalt.err (!%p1699_p4)
}
  0x57   : > { %s1703_s2 = scalar_lea.vmem %s2030_s19, 256  ;;  %s1839_s11 = smov [#allocation6]  }
  0x58   : > { %p1704_p11 = scmp.ne.s32.totalorder %s2030_s19, %s1703_s2  ;;  %s1708_s12 = sshll.u32 %s1839_s11, 4  ;;  %s1709_s12 = int_to_ptr.vmem [resolvable:$false] %s1708_s12 }
  0x59   : > { %s1710_s29 = scalar_lea.vmem %s1709_s12, 512  ;;  %p1711_p2 = scmp.lt.s32.totalorder %s2030_s19, %s1709_s12 }
  0x5a   : > { %p1706_p12 = pnand %p1704_p11, %p1692_p7  ;;  %p1712_p10 = scmp.lt.s32.totalorder %s1710_s29, %s1703_s2 }
  0x5c   : > { %p1707_p9 = pneg %p1706_p12  ;;  %p1713_p6 = por %p1712_p10, %p1711_p2 }
  0x5e   : > { %p1714_p5 = pnand %p1713_p6, %p1707_p9 }
  0x60   : > { %1717 = shalt.err (!%p1714_p5)
}
  0x61   : > { %s2337_s6 = smov 8   ;;  %s2338_s26 = smov 128  }
  0x62   : > { %s2339_s23 = smov 256   ;;  %s372_s4 = scalar_lea.vmem [#allocation9], %s2021_s21 }
  0x63   : > { %1515 = dma.hbm_to_vmem [thread:$0]  (!%p1994_p8), %s2027_s15, 256, %s2030_s19, %s2037_s28, %s2339_s23, %s2338_s26, %s2337_s6  }
  0x64   : > { %s378_s22 = sshll.u32 %s372_s4, 4  ;;  %s368_s30 = sand.u32 1, %s1826_s16   ;;  %s2069_s22 = int_to_ptr.vmem [resolvable:$true] %s378_s22 }
  0x65   : > { %s369_s2 = scalar_lea.sflag [#allocation10], %s368_s30  ;;  %s1718_s11 = scalar_lea.hbm %s2035_s20, 256 }
  0x66   : > { %p1719_p6 = scmp.ne.s32.totalorder %s2035_s20, %s1718_s11  ;;  %s1723_s0 = scalar_lea.hbm %s2291_s1, 512 }
  0x67   : > { %p1724_p3 = scmp.lt.s32.totalorder %s2035_s20, %s2291_s1  ;;  %p1725_p4 = scmp.lt.s32.totalorder %s1723_s0, %s1718_s11 }
  0x68   : > { %p1721_p1 = pnand %p1719_p6, %p1692_p7 }
  0x69   : > { %p1726_p11 = por %p1725_p4, %p1724_p3 }
  0x6a   : > { %p1722_p0 = pneg %p1721_p1 }
  0x6c   : > { %p1727_p12 = pnand %p1726_p11, %p1722_p0 }
  0x6e   : > { %1730 = shalt.err (!%p1727_p12)
}
  0x6f   : > { %s1731_s15 = scalar_lea.vmem %s2069_s22, 256  ;;  %s1840_s19 = smov [#allocation9]  }
  0x70   : > { %p1732_p9 = scmp.ne.s32.totalorder %s2069_s22, %s1731_s15  ;;  %s1736_s28 = sshll.u32 %s1840_s19, 4  ;;  %s1737_s28 = int_to_ptr.vmem [resolvable:$false] %s1736_s28 }
  0x71   : > { %s1738_s21 = scalar_lea.vmem %s1737_s28, 512  ;;  %p1739_p5 = scmp.lt.s32.totalorder %s2069_s22, %s1737_s28 }
  0x72   : > { %p1734_p2 = pnand %p1732_p9, %p1692_p7  ;;  %p1740_p6 = scmp.lt.s32.totalorder %s1738_s21, %s1731_s15 }
  0x74   : > { %p1735_p10 = pneg %p1734_p2  ;;  %p1741_p1 = por %p1740_p6, %p1739_p5 }
  0x76   : > { %p1742_p3 = pnand %p1741_p1, %p1735_p10 }
  0x78   : > { %1745 = shalt.err (!%p1742_p3)
}
  0x79   : > { %1518 = dma.hbm_to_vmem [thread:$0]  (!%p1994_p8), %s2035_s20, 256, %s2069_s22, %s369_s2, %s2339_s23, %s2338_s26, %s2337_s6  }
  0x7a   : > { %390 = sbr.rel (%p1964_p13) target bundleno = 1733 (0x6c5), region = 60  ;;  %s2099_s0 = sand.u32 (!%p1964_p13), 1, %s1818_s14  }
  0x7b   : > { %s2102_s10 = sshll.u32 (!%p1964_p13), %s2099_s0, 4  ;;  %s393_s13 = scalar_lea.sflag (!%p1964_p13), [#allocation7], %s2099_s0 }
  0x7c   : > { %s396_s18 = scalar_lea.vmem (!%p1964_p13), [#allocation6], %s2102_s10  ;;  %p2340_p7 = scmp.ne.s32.totalorder (!%p1964_p13), %s2326_s24, 0 }
  0x7f   : > { %1793 = dma.done.wait (%p2340_p7), %s393_s13, 256  }
  0x80   : > { %1795 = vsyncadd (%p2340_p7), %s393_s13, 4294967040  ;;  %s401_s27 = sand.u32 1, %s1925_s17   ;;  %s405_s6 = scalar_lea.vmem [#allocation9], %s2102_s10 }
  0x81   : > { %s402_s20 = scalar_lea.sflag [#allocation10], %s401_s27 }
  0x82   : > { %1797 = dma.done.wait (%p2340_p7), %s402_s20, 256  }
  0x83   : > { %1799 = vsyncadd (%p2340_p7), %s402_s20, 4294967040  ;;  %p2341_p13 = scmp.eq.s32.totalorder %s1925_s17, 0 }
  0x85   : > { %1801 = dma.done.wait (%p2341_p13), [#allocation10], 4096   ;;  %p2342_p8 = pmov %p2341_p13 }
  0x87   : > { %1803 = vsyncadd (%p2342_p8), [#allocation10], 4294963200  ;;  %p2343_p0 = pmov %p2342_p8 }
  0x89   : > { %1805 = dma.done.wait (%p2343_p0), [#allocation13], 4096   ;;  %p2344_p4 = pmov %p2343_p0 }
  0x8a   : > { %v1841_v0 = vmov 0.0   ;;  %v496_v1 = vld [vmem:[#allocation11 + $0xf8] sm:$0xff]  ;;  %v495_v3 = vld [vmem:[#allocation11 + $0xf0] sm:$0xff]  ;;  %v494_v4 = vld [vmem:[#allocation11 + $0xe8] sm:$0xff]  ;;  %v499_v55 = vlaneseq  ;;  %vm684_vm0 = vcmask 261120   ;;  %s1842_s22 = smov 96  }
  0x8b   : > { %1807 = vsyncadd (%p2344_p4), [#allocation13], 4294963200  ;;  %573 = vmatprep.mubr.f32.mxu0 %v1841_v0  ;;  %v601_v2 = vld [vmem:[#allocation12 + $0x78] sm:$0xff]  ;;  %509 = vmatprep.subr.mxu0 %v496_v1  ;;  %v600_v5 = vld [vmem:[#allocation12 + $0x70] sm:$0xff]  ;;  %s1843_s30 = smov 64   ;;  %s1844_s2 = smov 32  }
  0x8c   : > { %1400 = vmatprep.subr.mxu1 %v601_v2  ;;  %v493_v6 = vld [vmem:[#allocation11 + $0xe0] sm:$0xff]  ;;  %510 = vmatpush1.msra.mxu0 %v495_v3  ;;  %v492_v7 = vld [vmem:[#allocation11 + $0xd8] sm:$0xff]  ;;  %v599_v8 = vld [vmem:[#allocation12 + $0x68] sm:$0xff]  ;;  %v500_v56 = vshrl.u32 %v499_v55, 7  ;;  %s2191_s11 = scalar_lea.vmem [#allocation15], %s2102_s10  ;;  %s2193_s12 = smov 0  }
  0x8d   : > { %1401 = vmatpush3.msra.mxu1 %v601_v2  ;;  %511 = vmatprep.subr.mxu0 %v494_v4  ;;  %v491_v9 = vld [vmem:[#allocation11 + $0xd0] sm:$0xff]  ;;  %v490_v10 = vld [vmem:[#allocation11 + $0xc8] sm:$0xff]  ;;  %v598_v11 = vld [vmem:[#allocation12 + $0x60] sm:$0xff] }
  0x8e   : > { %1402 = vmatprep.subr.mxu1 %v600_v5  ;;  %512 = vmatpush1.msra.mxu0 %v493_v6  ;;  %v489_v12 = vld [vmem:[#allocation11 + $0xc0] sm:$0xff]  ;;  %v488_v13 = vld [vmem:[#allocation11 + $0xb8] sm:$0xff]  ;;  %v487_v15 = vld [vmem:[#allocation11 + $0xb0] sm:$0xff]  ;;  %v501_v57 = vsub.s32 0, %v500_v56  ;;  %v505_v59 = vsub.s32 1, %v500_v56 }
  0x8f   : > { %1403 = vmatpush3.msra.mxu1 %v600_v5  ;;  %513 = vmatprep.subr.mxu0 %v492_v7  ;;  %v597_v14 = vld [vmem:[#allocation12 + $0x58] sm:$0xff]  ;;  %v486_v16 = vld [vmem:[#allocation11 + $0xa8] sm:$0xff]  ;;  %v596_v17 = vld [vmem:[#allocation12 + $0x50] sm:$0xff] }
  0x90   : > { %1404 = vmatprep.subr.mxu1 %v599_v8  ;;  %514 = vmatpush1.msra.mxu0 %v491_v9  ;;  %v485_v18 = vld [vmem:[#allocation11 + $0xa0] sm:$0xff]  ;;  %v484_v19 = vld [vmem:[#allocation11 + $0x98] sm:$0xff]  ;;  %v595_v20 = vld [vmem:[#allocation12 + $0x48] sm:$0xff] }
  0x91   : > { %1405 = vmatpush3.msra.mxu1 %v599_v8  ;;  %515 = vmatprep.subr.mxu0 %v490_v10  ;;  %v483_v21 = vld [vmem:[#allocation11 + $0x90] sm:$0xff]  ;;  %v482_v22 = vld [vmem:[#allocation11 + $0x88] sm:$0xff]  ;;  %v594_v23 = vld [vmem:[#allocation12 + $0x40] sm:$0xff] }
  0x92   : > { %1406 = vmatprep.subr.mxu1 %v598_v11  ;;  %516 = vmatpush1.msra.mxu0 %v489_v12  ;;  %v481_v24 = vld [vmem:[#allocation11 + $0x80] sm:$0xff]  ;;  %v480_v25 = vld [vmem:[#allocation11 + $0x78] sm:$0xff]  ;;  %v479_v27 = vld [vmem:[#allocation11 + $0x70] sm:$0xff] }
  0x93   : > { %1407 = vmatpush3.msra.mxu1 %v598_v11  ;;  %517 = vmatprep.subr.mxu0 %v488_v13  ;;  %v593_v26 = vld [vmem:[#allocation12 + $0x38] sm:$0xff]  ;;  %v478_v28 = vld [vmem:[#allocation11 + $0x68] sm:$0xff]  ;;  %v592_v29 = vld [vmem:[#allocation12 + $0x30] sm:$0xff] }
  0x94   : > { %1408 = vmatprep.subr.mxu1 %v597_v14  ;;  %518 = vmatpush1.msra.mxu0 %v487_v15  ;;  %v477_v30 = vld [vmem:[#allocation11 + $0x60] sm:$0xff]  ;;  %v476_v31 = vld [vmem:[#allocation11 + $0x58] sm:$0xff]  ;;  %v591_v32 = vld [vmem:[#allocation12 + $0x28] sm:$0xff] }
  0x95   : > { %1409 = vmatpush3.msra.mxu1 %v597_v14  ;;  %519 = vmatprep.subr.mxu0 %v486_v16  ;;  %v475_v33 = vld [vmem:[#allocation11 + $0x50] sm:$0xff]  ;;  %v474_v34 = vld [vmem:[#allocation11 + $0x48] sm:$0xff]  ;;  %v590_v35 = vld [vmem:[#allocation12 + $0x20] sm:$0xff] }
  0x96   : > { %1410 = vmatprep.subr.mxu1 %v596_v17  ;;  %520 = vmatpush1.msra.mxu0 %v485_v18  ;;  %v473_v36 = vld [vmem:[#allocation11 + $0x40] sm:$0xff]  ;;  %v472_v37 = vld [vmem:[#allocation11 + $0x38] sm:$0xff]  ;;  %v471_v39 = vld [vmem:[#allocation11 + $0x30] sm:$0xff] }
  0x97   : > { %1411 = vmatpush3.msra.mxu1 %v596_v17  ;;  %521 = vmatprep.subr.mxu0 %v484_v19  ;;  %v589_v38 = vld [vmem:[#allocation12 + $0x18] sm:$0xff]  ;;  %v470_v40 = vld [vmem:[#allocation11 + $0x28] sm:$0xff]  ;;  %v588_v41 = vld [vmem:[#allocation12 + $0x10] sm:$0xff] }
  0x98   : > { %1412 = vmatprep.subr.mxu1 %v595_v20  ;;  %522 = vmatpush1.msra.mxu0 %v483_v21  ;;  %v469_v42 = vld [vmem:[#allocation11 + $0x20] sm:$0xff]  ;;  %v468_v43 = vld [vmem:[#allocation11 + $0x18] sm:$0xff]  ;;  %v587_v44 = vld [vmem:[#allocation12 + $0x8] sm:$0xff] }
  0x99   : > { %1413 = vmatpush3.msra.mxu1 %v595_v20  ;;  %523 = vmatprep.subr.mxu0 %v482_v22  ;;  %v2127_v45 = vld [vmem:[%s396_s18] sm:$0xff]  ;;  %v466_v48 = vld [vmem:[#allocation11 + $0x8] sm:$0xff] }
  0x9a   : > { %1414 = vmatprep.subr.mxu1 %v594_v23  ;;  %524 = vmatpush1.msra.mxu0 %v481_v24  ;;  %v461_v46 = vld [vmem:[%s405_s6] sm:$0xff]  ;;  %v462_v52 = vld [vmem:[%s405_s6 + $0x8] sm:$0xff] }
  0x9b   : > { %1415 = vmatpush3.msra.mxu1 %v594_v23  ;;  %525 = vmatprep.subr.mxu0 %v480_v25  ;;  %v467_v47 = vld [vmem:[#allocation11 + $0x10] sm:$0xff]  ;;  %v586_v49 = vld [vmem:[#allocation12] sm:$0xff]  ;;  %v463_v51 = vadd.f32 %v461_v46, %v2127_v45  ;;  %v2136_v53 = vld [vmem:[%s396_s18 + $0x8] sm:$0xff] }
  0x9c   : > { %1416 = vmatprep.subr.mxu1 %v593_v26  ;;  %526 = vmatpush1.msra.mxu0 %v479_v27  ;;  %v465_v50 = vld [vmem:[#allocation11] sm:$0xff]  ;;  %v464_v54 = vadd.f32 %v462_v52, %v2136_v53 }
  0x9d   : > { %1417 = vmatpush3.msra.mxu1 %v593_v26  ;;  %527 = vmatprep.subr.mxu0 %v478_v28  ;;  %v497_v58 = vld [vmem:[%s2293_s3] sm:$0x3] }
  0x9e   : > { %1418 = vmatprep.subr.mxu1 %v592_v29  ;;  %528 = vmatpush1.msra.mxu0 %v477_v30  ;;  %v502_v60 = vrot.slane %v497_v58, %v501_v57  ;;  %v1341_v61 = vld [vmem:[%s2295_s5] ss:$0 sm:$0xff]  ;;  %v506_v62 = vrot.slane %v497_v58, %v505_v59 }
  0x9f   : > { %1419 = vmatpush3.msra.mxu1 %v592_v29  ;;  %529 = vmatprep.subr.mxu0 %v476_v31 }
  0xa0   : > { %1420 = vmatprep.subr.mxu1 %v591_v32  ;;  %530 = vmatpush1.msra.mxu0 %v475_v33 }
  0xa1   : > { %1421 = vmatpush3.msra.mxu1 %v591_v32  ;;  %531 = vmatprep.subr.mxu0 %v474_v34 }
  0xa2   : > { %1422 = vmatprep.subr.mxu1 %v590_v35  ;;  %532 = vmatpush1.msra.mxu0 %v473_v36 }
  0xa3   : > { %1423 = vmatpush3.msra.mxu1 %v590_v35  ;;  %533 = vmatprep.subr.mxu0 %v472_v37 }
  0xa4   : > { %1424 = vmatprep.subr.mxu1 %v589_v38  ;;  %534 = vmatpush1.msra.mxu0 %v471_v39 }
  0xa5   : > { %1425 = vmatpush3.msra.mxu1 %v589_v38  ;;  %535 = vmatprep.subr.mxu0 %v470_v40 }
  0xa6   : > { %1426 = vmatprep.subr.mxu1 %v588_v41  ;;  %536 = vmatpush1.msra.mxu0 %v469_v42 }
  0xa7   : > { %1427 = vmatpush3.msra.mxu1 %v588_v41  ;;  %537 = vmatprep.subr.mxu0 %v468_v43 }
  0xa8   : > { %1428 = vmatprep.subr.mxu1 %v587_v44  ;;  %538 = vmatpush1.msra.mxu0 %v467_v47 }
  0xa9   : > { %1429 = vmatpush3.msra.mxu1 %v587_v44  ;;  %539 = vmatprep.subr.mxu0 %v466_v48 }
  0xaa   : > { %1430 = vmatprep.subr.mxu1 %v586_v49  ;;  %540 = vmatpush1.msra.mxu0 %v465_v50 }
  0xab   : > { %1431 = vmatpush3.msra.mxu1 %v586_v49  ;;  %1432 = vmatprep.mubr.f32.mxu1 %v2127_v45 }
  0xac   : > { %574 = vmatmul.mubr.f32.vlgmr.msra.gmra.mxu0 %v463_v51  ;;  %1433 = vmatmul.mubr.f32.vlgmr.msra.gmra.mxu1 %v2136_v53 }
  0xad   : > { %579 = vmatprep.mubr.f32.mxu0 %v1841_v0 }
  0xb0   : > { %580 = vmatmul.mubr.f32.gmra.mxu0 %v464_v54 }
 0x16c   : > { %v575_v63 = vpop.f32.mrf.mxu0  ;;  %v1434_v2 = vpop.f32.mrf.mxu1 }
 0x16d   : > { %v576_v1 = vadd.f32 %v575_v63, %v502_v60  ;;  %v681_v0 = vadd.f32 %v1434_v2, %v1341_v61 }
 0x16e   : > { %v577_v3 = vpop.f32.mrf.mxu0  ;;  %v675_v5 = vpop.f32.mrf.mxu1 }
 0x16f   : > { %685 = vst.msk [vmem:[#allocation2] sm:$0xff] %vm684_vm0, %v576_v1  ;;  %v578_v4 = vadd.f32 %v577_v3, %v506_v62  ;;  %693 = vrot.lane.b32.xlu0 %v576_v1, %s1842_s22  ;;  %690 = vst.msk [vmem:[#allocation4 + $0x8] sm:$0xff] %vm684_vm0, %v681_v0  ;;  %v676_v6 = vadd.f32 %v1341_v61, %v675_v5  ;;  %717 = vrot.lane.b32.xlu1 %v681_v0, %s1842_s22 }
 0x170   : > { %v581_v7 = vpop.f32.mrf.mxu0 }
 0x171   : > { %687 = vst.msk [vmem:[#allocation3] sm:$0xff] %vm684_vm0, %v578_v4  ;;  %v582_v8 = vadd.f32 %v581_v7, %v502_v60  ;;  %689 = vst.msk [vmem:[#allocation4] sm:$0xff] %vm684_vm0, %v676_v6 }
 0x172   : > { %v583_v9 = vpop.f32.mrf.mxu0 }
 0x173   : > { %724 = vrot.lane.b32.xlu0 %v576_v1, %s1843_s30  ;;  %686 = vst.msk [vmem:[#allocation2 + $0x8] sm:$0xff] %vm684_vm0, %v582_v8  ;;  %v584_v10 = vadd.f32 %v583_v9, %v506_v62  ;;  %744 = vrot.lane.b32.xlu1 %v681_v0, %s1843_s30 }
 0x175   : > { %688 = vst.msk [vmem:[#allocation3 + $0x8] sm:$0xff] %vm684_vm0, %v584_v10 }
 0x177   : > { %751 = vrot.lane.b32.xlu0 %v576_v1, %s1844_s2  ;;  %704 = vrot.lane.b32.xlu1 %v578_v4, %s1842_s22 }
 0x17b   : > { %715 = vrot.lane.b32.xlu0 %v676_v6, %s1842_s22  ;;  %726 = vrot.lane.b32.xlu1 %v582_v8, %s1843_s30 }
 0x17f   : > { %733 = vrot.lane.b32.xlu0 %v578_v4, %s1843_s30  ;;  %753 = vrot.lane.b32.xlu1 %v582_v8, %s1844_s2 }
 0x183   : > { %742 = vrot.lane.b32.xlu0 %v676_v6, %s1843_s30  ;;  %706 = vrot.lane.b32.xlu1 %v584_v10, %s1842_s22 }
 0x187   : > { %760 = vrot.lane.b32.xlu0 %v578_v4, %s1844_s2  ;;  %735 = vrot.lane.b32.xlu1 %v584_v10, %s1843_s30 }
 0x18b   : > { %695 = vrot.lane.b32.xlu0 %v582_v8, %s1842_s22  ;;  %762 = vrot.lane.b32.xlu1 %v584_v10, %s1844_s2 }
 0x18f   : > { %769 = vrot.lane.b32.xlu0 %v676_v6, %s1844_s2  ;;  %771 = vrot.lane.b32.xlu1 %v681_v0, %s1844_s2 }
 0x1e1   : > { %v694_v11 = vpop.permute.xlu0 %693  ;;  %v718_v12 = vpop.permute.xlu1 %717 }
 0x1e2   : > { %700 = vst.msk [vmem:[#allocation2 + $0x10] sm:$0xff] %vm684_vm0, %v694_v11  ;;  %723 = vst.msk [vmem:[#allocation4 + $0x18] sm:$0xff] %vm684_vm0, %v718_v12 }
 0x1e5   : > { %v725_v13 = vpop.permute.xlu0 %724  ;;  %v745_v14 = vpop.permute.xlu1 %744 }
 0x1e6   : > { %731 = vst.msk [vmem:[#allocation2 + $0x20] sm:$0xff] %vm684_vm0, %v725_v13  ;;  %750 = vst.msk [vmem:[#allocation4 + $0x28] sm:$0xff] %vm684_vm0, %v745_v14 }
 0x1e9   : > { %v752_v15 = vpop.permute.xlu0 %751  ;;  %v705_v16 = vpop.permute.xlu1 %704 }
 0x1ea   : > { %758 = vst.msk [vmem:[#allocation2 + $0x30] sm:$0xff] %vm684_vm0, %v752_v15  ;;  %711 = vst.msk [vmem:[#allocation3 + $0x10] sm:$0xff] %vm684_vm0, %v705_v16 }
 0x1ed   : > { %v716_v17 = vpop.permute.xlu0 %715  ;;  %v727_v18 = vpop.permute.xlu1 %726 }
 0x1ee   : > { %722 = vst.msk [vmem:[#allocation4 + $0x10] sm:$0xff] %vm684_vm0, %v716_v17  ;;  %732 = vst.msk [vmem:[#allocation2 + $0x28] sm:$0xff] %vm684_vm0, %v727_v18 }
 0x1f1   : > { %v734_v19 = vpop.permute.xlu0 %733  ;;  %v754_v20 = vpop.permute.xlu1 %753 }
 0x1f2   : > { %740 = vst.msk [vmem:[#allocation3 + $0x20] sm:$0xff] %vm684_vm0, %v734_v19  ;;  %759 = vst.msk [vmem:[#allocation2 + $0x38] sm:$0xff] %vm684_vm0, %v754_v20 }
 0x1f5   : > { %v743_v21 = vpop.permute.xlu0 %742  ;;  %v707_v22 = vpop.permute.xlu1 %706 }
 0x1f6   : > { %749 = vst.msk [vmem:[#allocation4 + $0x20] sm:$0xff] %vm684_vm0, %v743_v21  ;;  %712 = vst.msk [vmem:[#allocation3 + $0x18] sm:$0xff] %vm684_vm0, %v707_v22 }
 0x1f9   : > { %v761_v23 = vpop.permute.xlu0 %760  ;;  %v736_v24 = vpop.permute.xlu1 %735 }
 0x1fa   : > { %767 = vst.msk [vmem:[#allocation3 + $0x30] sm:$0xff] %vm684_vm0, %v761_v23  ;;  %741 = vst.msk [vmem:[#allocation3 + $0x28] sm:$0xff] %vm684_vm0, %v736_v24 }
 0x1fd   : > { %v696_v25 = vpop.permute.xlu0 %695  ;;  %v763_v26 = vpop.permute.xlu1 %762 }
 0x1fe   : > { %701 = vst.msk [vmem:[#allocation2 + $0x18] sm:$0xff] %vm684_vm0, %v696_v25  ;;  %768 = vst.msk [vmem:[#allocation3 + $0x38] sm:$0xff] %vm684_vm0, %v763_v26 }
 0x201   : > { %v770_v27 = vpop.permute.xlu0 %769  ;;  %v772_v28 = vpop.permute.xlu1 %771 }
 0x202   : > { %776 = vst.msk [vmem:[#allocation4 + $0x30] sm:$0xff] %vm684_vm0, %v770_v27  ;;  %777 = vst.msk [vmem:[#allocation4 + $0x38] sm:$0xff] %vm684_vm0, %v772_v28 }
 0x203 LB: >> { %s2199_s29 = sshll.u32 %s1830_s12, 4  ;;  %vm881_vm1 = vcmask 130048   ;;  %s783_s12 = sadd.s32 1, %s1830_s12   ;;  %s1830_s12 = sphi %s2193_s12, %s783_s12  }
 0x204   : >> { %s788_s15 = scalar_lea.vmem [#allocation3], %s2199_s29  ;;  %s785_s19 = scalar_lea.vmem [#allocation2], %s2199_s29 }
 0x205   : >> { %v790_v29 = vld [vmem:[%s788_s15 + $0x8] sm:$0xff]  ;;  %v789_v30 = vld [vmem:[%s788_s15] sm:$0xff]  ;;  %s791_s28 = scalar_lea.vmem [#allocation4], %s2199_s29  ;;  %s985_s21 = scalar_lea.vmem [#allocation5], %s2199_s29 }
 0x206   : >> { %v786_v31 = vld [vmem:[%s785_s19] sm:$0xff]  ;;  %1435 = vmatprep.subr.msk.mxu0 %vm684_vm0, %v790_v29  ;;  %v787_v32 = vld [vmem:[%s785_s19 + $0x8] sm:$0xff]  ;;  %p780_p11 = scmp.ge.s32.totalorder %s783_s12, 4  }
 0x207   : >> { %1439 = vmatprep.mubr.msk.f32.mxu0 %vm684_vm0, %v786_v31  ;;  %1436 = vmatpush3.xpose.msk.msra.mxu0 %vm684_vm0, %v790_v29  ;;  %v1046_v3 = vld [vmem:[#allocation14 + $0x78] sm:$0xff] (%p780_p11)  ;;  %v1045_v4 = vld [vmem:[#allocation14 + $0x70] sm:$0xff] (%p780_p11)  ;;  %v1044_v6 = vld [vmem:[#allocation14 + $0x68] sm:$0xff] (%p780_p11)  ;;  %vm1025_vm2 = vcmask (%p780_p11), 523264   ;;  %vm1028_vm3 = vcmask (%p780_p11), 785408   ;;  %s1353_s24 = sshll.u32 (%p780_p11), %s1925_s17, 7 }
 0x208   : >> { %1437 = vmatprep.subr.msk.mxu0 %vm684_vm0, %v789_v30  ;;  %v1043_v7 = vld [vmem:[#allocation14 + $0x60] sm:$0xff] (%p780_p11)  ;;  %v1042_v8 = vld [vmem:[#allocation14 + $0x58] sm:$0xff] (%p780_p11)  ;;  %v1041_v9 = vld [vmem:[#allocation14 + $0x50] sm:$0xff] (%p780_p11)  ;;  %s1187_s26 = sshll.u32 (%p780_p11), %s2191_s11, 4  ;;  %p2346_p9 = scmp.ne.s32.totalorder (%p780_p11), %s2327_s25, 0  ;;  %s2245_s26 = int_to_ptr.vmem [resolvable:$true] %s1187_s26 }
 0x209   : >> { %v793_v37 = vld [vmem:[%s791_s28 + $0x8] sm:$0xff]  ;;  %v792_v38 = vld [vmem:[%s791_s28] sm:$0xff]  ;;  %v1038_v12 = vld [vmem:[#allocation14 + $0x38] sm:$0xff] (%p780_p11)  ;;  %s1746_s17 = scalar_lea.vmem (%p780_p11), %s2245_s26, 256  ;;  %s1845_s12 = smov (%p780_p11), [#allocation15]  }
 0x20a   : >> { %1442 = vmatprep.subr.mxu1 %v793_v37  ;;  %v1040_v10 = vld [vmem:[#allocation14 + $0x48] sm:$0xff] (%p780_p11)  ;;  %v1039_v11 = vld [vmem:[#allocation14 + $0x40] sm:$0xff] (%p780_p11)  ;;  %v1037_v13 = vld [vmem:[#allocation14 + $0x30] sm:$0xff] (%p780_p11)  ;;  %p1747_p12 = scmp.ne.s32.totalorder (%p780_p11), %s2245_s26, %s1746_s17  ;;  %s1750_s29 = sshll.u32 (%p780_p11), %s1845_s12, 4  ;;  %s1751_s29 = int_to_ptr.vmem [resolvable:$false] %s1750_s29 }
 0x20b   : >> { %1438 = vmatpush3.xpose.msk.msra.mxu0 %vm684_vm0, %v789_v30  ;;  %1443 = vmatpush3.msra.mxu1 %v793_v37  ;;  %v1036_v14 = vld [vmem:[#allocation14 + $0x28] sm:$0xff] (%p780_p11)  ;;  %v1035_v15 = vld [vmem:[#allocation14 + $0x20] sm:$0xff] (%p780_p11)  ;;  %v1034_v16 = vld [vmem:[#allocation14 + $0x18] sm:$0xff] (%p780_p11)  ;;  %s1752_s15 = scalar_lea.vmem (%p780_p11), %s1751_s29, 512  ;;  %p1753_p5 = scmp.lt.s32.totalorder (%p780_p11), %s2245_s26, %s1751_s29 }
 0x20c   : >> { %1444 = vmatprep.subr.mxu1 %v792_v38  ;;  %1449 = vmatprep.subr.mxu0 (%p780_p11), %v1046_v3  ;;  %v1033_v17 = vld [vmem:[#allocation14 + $0x10] sm:$0xff] (%p780_p11)  ;;  %v1032_v18 = vld [vmem:[#allocation14 + $0x8] sm:$0xff] (%p780_p11)  ;;  %v1031_v19 = vld [vmem:[#allocation14] sm:$0xff] (%p780_p11)  ;;  %p1748_p2 = pnand (%p780_p11), %p1747_p12, %p2346_p9  ;;  %p1754_p6 = scmp.lt.s32.totalorder (%p780_p11), %s1752_s15, %s1746_s17 }
 0x20d   : >> { %1445 = vmatpush3.msra.mxu1 %v792_v38  ;;  %v1349_v37 = vld [vmem:[%s2297_s7] ss:$0 sm:$0xff] (%p780_p11) }
 0x20e   : >> { %1440 = vmatmul.mubr.msk.f32.vlgmr.msra.gmra.mxu0 %vm684_vm0, %v787_v32  ;;  %p1749_p10 = pneg (%p780_p11), %p1748_p2  ;;  %p1755_p1 = por (%p780_p11), %p1754_p6, %p1753_p5 }
 0x20f   : > { %1450 = vmatpush3.msra.mxu0 (%p780_p11), %v1046_v3 }
 0x210   : > { %1451 = vmatprep.subr.mxu0 (%p780_p11), %v1045_v4  ;;  %p1756_p3 = pnand (%p780_p11), %p1755_p1, %p1749_p10 }
 0x211   : > { %1452 = vmatpush3.msra.mxu0 (%p780_p11), %v1045_v4 }
 0x212   : > { %1453 = vmatprep.subr.mxu0 (%p780_p11), %v1044_v6 }
 0x213   : > { %1454 = vmatpush3.msra.mxu0 (%p780_p11), %v1044_v6 }
 0x214   : > { %1455 = vmatprep.subr.mxu0 (%p780_p11), %v1043_v7 }
 0x215   : > { %1456 = vmatpush3.msra.mxu0 (%p780_p11), %v1043_v7 }
 0x216   : > { %1457 = vmatprep.subr.mxu0 (%p780_p11), %v1042_v8 }
 0x217   : > { %1458 = vmatpush3.msra.mxu0 (%p780_p11), %v1042_v8 }
 0x218   : > { %1459 = vmatprep.subr.mxu0 (%p780_p11), %v1041_v9 }
 0x219   : > { %1460 = vmatpush3.msra.mxu0 (%p780_p11), %v1041_v9 }
 0x21a   : > { %1461 = vmatprep.subr.mxu0 (%p780_p11), %v1040_v10 }
 0x21b   : > { %1462 = vmatpush3.msra.mxu0 (%p780_p11), %v1040_v10 }
 0x21c   : > { %1463 = vmatprep.subr.mxu0 (%p780_p11), %v1039_v11 }
 0x21d   : > { %1464 = vmatpush3.msra.mxu0 (%p780_p11), %v1039_v11 }
 0x21e   : > { %1465 = vmatprep.subr.mxu0 (%p780_p11), %v1038_v12 }
 0x21f   : > { %1466 = vmatpush3.msra.mxu0 (%p780_p11), %v1038_v12 }
 0x220   : > { %1467 = vmatprep.subr.mxu0 (%p780_p11), %v1037_v13 }
 0x221   : > { %1468 = vmatpush3.msra.mxu0 (%p780_p11), %v1037_v13 }
 0x222   : > { %1469 = vmatprep.subr.mxu0 (%p780_p11), %v1036_v14 }
 0x223   : > { %1470 = vmatpush3.msra.mxu0 (%p780_p11), %v1036_v14 }
 0x224   : > { %1471 = vmatprep.subr.mxu0 (%p780_p11), %v1035_v15 }
 0x225   : > { %1472 = vmatpush3.msra.mxu0 (%p780_p11), %v1035_v15 }
 0x226   : > { %1473 = vmatprep.subr.mxu0 (%p780_p11), %v1034_v16 }
 0x227   : > { %1474 = vmatpush3.msra.mxu0 (%p780_p11), %v1034_v16 }
 0x228   : > { %1475 = vmatprep.subr.mxu0 (%p780_p11), %v1033_v17 }
 0x229   : > { %1476 = vmatpush3.msra.mxu0 (%p780_p11), %v1033_v17 }
 0x22a   : > { %1477 = vmatprep.subr.mxu0 (%p780_p11), %v1032_v18 }
 0x22b   : > { %1478 = vmatpush3.msra.mxu0 (%p780_p11), %v1032_v18 }
 0x22c   : > { %1479 = vmatprep.subr.mxu0 (%p780_p11), %v1031_v19 }
 0x22d   : > { %1480 = vmatpush3.msra.mxu0 (%p780_p11), %v1031_v19 }
 0x2ce   : >> { %v1441_v33 = vpop.f32.mrf.mxu0 }
 0x2cf   : >> { %v885_v36 = vsel %vm881_vm1, %v1441_v33, -inf }
 0x2d0   : >> { %v872_v34 = vpop.f32.mrf.mxu0 }
 0x2d1   : >> { %v882_v35 = vsel %vm881_vm1, %v872_v34, -inf }
 0x2d2   : >> { %883 = vmax.xlane.f32.xlu0 %v882_v35 }
 0x2d6   : >> { %886 = vmax.xlane.f32.xlu0 %v885_v36 }
 0x35b   : >> { %v884_v39 = vpop.xlane.xlu0 %883 }
 0x35c   : >> { %v888_v40 = vsub.f32 %v872_v34, %v884_v39 }
 0x35e   : >> { %v890_v41 = vmul.f32 1.442695, %v888_v40 }
 0x35f   : >> { %v887_v42 = vpop.xlane.xlu0 %886 }
 0x360   : >> { %1585 = vpow2.f32 %v890_v41  ;;  %v889_v43 = vsub.f32 %v1441_v33, %v887_v42 }
 0x362   : >> { %v892_v44 = vmul.f32 1.442695, %v889_v43 }
 0x364   : >> { %1587 = vpow2.f32 %v892_v44 }
 0x36d   : >> { %v1586_v46 = vpop.eup %1585 }
 0x36e   : >> { %1446 = vmatprep.mubr.msk.f32.mxu1 %vm881_vm1, %v1586_v46  ;;  %v894_v47 = vsel %vm881_vm1, %v1586_v46, 0.0 }
 0x36f   : >> { %895 = vadd.xlane.f32.xlu1 %v894_v47 }
 0x371   : >> { %v1588_v48 = vpop.eup %1587 }
 0x372   : >> { %1447 = vmatmul.mubr.msk.f32.vlgmr.msra.gmra.mxu1 %vm881_vm1, %v1588_v48  ;;  %v897_v49 = vsel %vm881_vm1, %v1588_v48, 0.0 }
 0x373   : >> { %898 = vadd.xlane.f32.xlu1 %v897_v49 }
 0x3f8   : >> { %v896_v50 = vpop.xlane.xlu1 %895 }
 0x3fc   : >> { %v899_v51 = vpop.xlane.xlu1 %898 }
 0x3fd   : >> { %1589 = vrcp.f32 %v899_v51 }
 0x3fe   : >> { %1591 = vrcp.f32 %v896_v50 }
 0x40a   : >> { %v1590_v52 = vpop.eup %1589 }
 0x40b   : >> { %v1592_v56 = vpop.eup %1591 }
 0x432   : >> { %v1448_v54 = vpop.f32.mrf.mxu1 }
 0x433   : >> { %v984_v55 = vmul.f32 %v1590_v52, %v1448_v54  ;;  %782 = sbr.rel (!%p780_p11) target bundleno = 515 (0x203), region = 153 }
 0x434   : >> { %v972_v57 = vpop.f32.mrf.mxu1 }
 0x435   : >> { %987 = vst.msk [vmem:[%s985_s21 + $0x8] sm:$0xff] %vm684_vm0, %v984_v55  ;;  %v983_v58 = vmul.f32 %v1592_v56, %v972_v57 }
 0x437   : >> { %986 = vst.msk [vmem:[%s985_s21] sm:$0xff] %vm684_vm0, %v983_v58 }
 0x43e   : > { %v991_v59 = vld [vmem:[#allocation5 + $0x10] sm:$0xff]  ;;  %v992_v60 = vld [vmem:[#allocation5 + $0x18] sm:$0xff]  ;;  %v994_v61 = vld [vmem:[#allocation5 + $0x20] sm:$0xff] }
 0x43f   : > { %v1593_v62 = vpack.i.bf16 %v992_v60, %v991_v59  ;;  %v995_v63 = vld [vmem:[#allocation5 + $0x28] sm:$0xff]  ;;  %v997_v1 = vld [vmem:[#allocation5 + $0x30] sm:$0xff]  ;;  %v998_v2 = vld [vmem:[#allocation5 + $0x38] sm:$0xff] }
 0x440   : > { %v1603_v0 = vpack.i.bf16 %v998_v2, %v997_v1  ;;  %v1598_v5 = vpack.i.bf16 %v995_v63, %v994_v61  ;;  %v988_v24 = vld [vmem:[#allocation5] sm:$0xff]  ;;  %v989_v25 = vld [vmem:[#allocation5 + $0x8] sm:$0xff] }
 0x441   : > { %1594 = vrot.lane.b32.xlu0 %v1593_v62, %s1844_s2  ;;  %v1350_v59 = vld [vmem:[%s2298_s8] ss:$0 sm:$0xff]  ;;  %s1175_s2 = scalar_lea.sflag [#allocation8], %s2099_s0 }
 0x442   : > { %1604 = vrot.lane.b32.xlu1 %v1603_v0, %s1842_s22  ;;  %v1351_v62 = vld [vmem:[%s2299_s9] ss:$0 sm:$0xff]  ;;  %s2345_s22 = sld [smem:[#allocation30_spill]] }
 0x445   : > { %1599 = vrot.lane.b32.xlu0 %v1598_v5, %s1843_s30 }
 0x448   : > { %s2243_s30 = scalar_lea.hbm %s2345_s22, %s1353_s24 }
 0x4b3   : > { %v1595_v20 = vpop.permute.xlu0 %1594 }
 0x4b4   : > { %v1605_v21 = vpop.permute.xlu1 %1604  ;;  %v1597_v22 = vunpack.i.h.bf16 %v1595_v20  ;;  %v1596_v23 = vunpack.i.l.bf16 %v1595_v20 }
 0x4b5   : > { %v1607_v27 = vunpack.i.h.bf16 %v1605_v21  ;;  %v1606_v28 = vunpack.i.l.bf16 %v1605_v21 }
 0x4b6   : > { %v1023_v31 = vsel %vm684_vm0, %v988_v24, %v1596_v23  ;;  %v1024_v32 = vsel %vm684_vm0, %v989_v25, %v1597_v22 }
 0x4b7   : > { %v1600_v26 = vpop.permute.xlu0 %1599 }
 0x4b8   : > { %v1602_v29 = vunpack.i.h.bf16 %v1600_v26  ;;  %v1601_v30 = vunpack.i.l.bf16 %v1600_v26 }
 0x4ba   : > { %v1026_v33 = vsel %vm1025_vm2, %v1023_v31, %v1601_v30  ;;  %v1027_v34 = vsel %vm1025_vm2, %v1024_v32, %v1602_v29 }
 0x4bb   : > { %v1029_v35 = vsel %vm1028_vm3, %v1026_v33, %v1606_v28  ;;  %v1030_v36 = vsel %vm1028_vm3, %v1027_v34, %v1607_v27 }
 0x4bc   : > { %1481 = vmatprep.mubr.f32.mxu0 %v1029_v35 }
 0x4bd   : > { %1482 = vmatmul.mubr.f32.vlgmr.msra.gmra.mxu0 %v1030_v36 }
 0x57d   : > { %v1483_v38 = vpop.f32.mrf.mxu0 }
 0x57e   : > { %v1126_v39 = vadd.f32 %v1483_v38, %v1349_v37 }
 0x57f   : > { %v1120_v40 = vpop.f32.mrf.mxu0 }
 0x580   : > { %v1130_v41 = vadd.f32 %v1126_v39, %v2136_v53  ;;  %v1121_v42 = vadd.f32 %v1349_v37, %v1120_v40 }
 0x582   : > { %v1129_v43 = vadd.f32 %v1121_v42, %v2127_v45  ;;  %1133 = vadd.xlane.f32.xlu0 %v1130_v41 }
 0x584   : > { %1131 = vadd.xlane.f32.xlu1 %v1129_v43 }
 0x60b   : > { %v1134_v44 = vpop.xlane.xlu0 %1133 }
 0x60c   : > { %v1137_v46 = vmul.f32 0.0078125, %v1134_v44 }
 0x60d   : > { %v1132_v47 = vpop.xlane.xlu1 %1131 }
 0x60e   : > { %v1139_v48 = vsub.f32 %v1130_v41, %v1137_v46  ;;  %v1136_v49 = vmul.f32 0.0078125, %v1132_v47 }
 0x610   : > { %v1138_v50 = vsub.f32 %v1129_v43, %v1136_v49  ;;  %v1141_v51 = vmul.f32 %v1139_v48, %v1139_v48 }
 0x612   : > { %1144 = vadd.xlane.f32.xlu1 %v1141_v51  ;;  %v1140_v52 = vmul.f32 %v1138_v50, %v1138_v50 }
 0x614   : > { %1142 = vadd.xlane.f32.xlu0 %v1140_v52 }
 0x69b   : > { %v1145_v54 = vpop.xlane.xlu1 %1144 }
 0x69c   : > { %v1147_v55 = vmul.f32 0.0078125, %v1145_v54 }
 0x69d   : > { %v1143_v53 = vpop.xlane.xlu0 %1142 }
 0x69e   : > { %v1149_v56 = vadd.f32 1e-05, %v1147_v55  ;;  %v1146_v57 = vmul.f32 0.0078125, %v1143_v53 }
 0x6a0   : > { %1608 = vrsqrt.f32 %v1149_v56  ;;  %v1148_v45 = vadd.f32 1e-05, %v1146_v57 }
 0x6a2   : > { %1610 = vrsqrt.f32 %v1148_v45 }
 0x6ad   : > { %v1609_v58 = vpop.eup %1608 }
 0x6ae   : > { %v1153_v60 = vmul.f32 %v1609_v58, %v1139_v48 }
 0x6af   : > { %v1611_v61 = vpop.eup %1610 }
 0x6b0   : > { %v1162_v63 = vmul.f32 %v1350_v59, %v1153_v60  ;;  %v1152_v1 = vmul.f32 %v1611_v61, %v1138_v50 }
 0x6b2   : > { %v1161_v2 = vmul.f32 %v1350_v59, %v1152_v1  ;;  %v1171_v0 = vadd.f32 %v1351_v62, %v1162_v63 }
 0x6b4   : > { %v1170_v3 = vadd.f32 %v1351_v62, %v1161_v2  ;;  %1173 = vst [vmem:[%s2191_s11 + $0x8] sm:$0xff] %v1171_v0 }
 0x6b6   : > { %1172 = vst [vmem:[%s2191_s11] sm:$0xff] %v1170_v3 }
 0x6b7   : > { %1759 = shalt.err (!%p1756_p3)
}
 0x6b8   : > { %s1760_s11 = scalar_lea.hbm %s2243_s30, 256  ;;  %s1764_s21 = scalar_lea.hbm %s2345_s22, 512 }
 0x6b9   : > { %p1761_p7 = scmp.ne.s32.totalorder %s2243_s30, %s1760_s11  ;;  %p1765_p0 = scmp.lt.s32.totalorder %s2243_s30, %s2345_s22 }
 0x6ba   : > { %p1766_p4 = scmp.lt.s32.totalorder %s1764_s21, %s1760_s11 }
 0x6bb   : > { %p1762_p13 = pnand %p1761_p7, %p2346_p9 }
 0x6bc   : > { %p1767_p11 = por %p1766_p4, %p1765_p0 }
 0x6bd   : > { %p1763_p8 = pneg %p1762_p13 }
 0x6bf   : > { %p1768_p12 = pnand %p1767_p11, %p1763_p8 }
 0x6c1   : > { %1771 = shalt.err (!%p1768_p12)
}
 0x6c2   : > { %s1846_s18 = smov 128   ;;  %s1847_s27 = smov 256  }
 0x6c3   : > { %s1848_s20 = smov 8  }
 0x6c4   : > { %1500 = dma.vmem_to_hbm [thread:$0]  (%p2346_p9), %s2245_s26, 256, %s2243_s30, %s1175_s2, %s1846_s18, %s1847_s27, %s1848_s20  }
 0x6c5 PF: > { %s2347_s6 = sld [smem:[#allocation21_spill]]  ;;  %p2350_p10 = scmp.ge.s32.totalorder %s1826_s16, 2 }
 0x6c6   : > { %s2348_s24 = sld [smem:[#allocation25_spill]] }
 0x6cb   : > { %s1202_s23 = sand.u32 1, %s2347_s6  }
 0x6cc   : > { %p2349_p2 = scmp.ne.s32.totalorder %s2348_s24, 0  ;;  %s1203_s4 = scalar_lea.sflag [#allocation8], %s1202_s23 }
 0x6ce   : > { %p1520_p5 = pnand %p2350_p10, %p2349_p2 }
 0x6d0   : > { %p1521_p6 = pneg %p1520_p5 }
 0x6d2   : > { %1809 = dma.done.wait (%p1521_p6), %s1203_s4, 256  }
 0x6d3   : > { %1811 = vsyncadd (%p1521_p6), %s1203_s4, 4294967040  ;;  %s2351_s16 = sld [smem:[#allocation23_spill]]  ;;  %s2354_s13 = smov %s1818_s14 }
 0x6d4   : > { %s2352_s17 = sld [smem:[#allocation22_spill]] }
 0x6d5   : > { %s2353_s15 = sld [smem:[#allocation24_spill]] }
 0x6d9   : > { %p27_p1 = scmp.ge.s32.totalorder %s2351_s16, 4  }
 0x6da   : > { %s2355_s14 = smov %s2352_s17 }
 0x6db   :  { %29 = sbr.rel (!%p27_p1) target bundleno = 14 (0xe), region = 164 }
 0x6e0   :  { %1208 = vsyncpa [#allocation7], 1 }
 0x6e1   :  { %1210 = vsyncpa [#allocation7 + $0x1], 1 }
 0x6e2   :  { %1211 = vsyncpa [#allocation10], 1 }
 0x6e3   :  { %1213 = vsyncpa [#allocation10 + $0x1], 1 }
 0x6e4   :  { %1214 = vsyncpa [#allocation13], 1 }
 0x6e5   :  { %1215 = vsyncpa [#allocation8], 1 }
 0x6e6   :  { %1217 = vsyncpa [#allocation8 + $0x1], 1 }

</bundles_post_ra>
